<compile_context>
chip_gen: v6e
topology: v6e:2x2x1
jax: 0.10.0
libtpu: 0.0.40
codegen_flags: <defaults>
</compile_context>

<pallas_src>
import functools

import jax
import jax.numpy as jnp
from jax.experimental import pallas as pl
from jax.experimental.pallas import tpu as pltpu

EPS = 1e-5


# ----------------------------- Pallas kernel ------------------------------- #

def conv_bn_relu_kernel(xcol_ref, w_ref, g_ref, b_ref, o_ref,
                        sum_ref, sumsq_ref, scale_ref, shift_ref, *, m, eps):
    p = pl.program_id(0)   # 0 = stats pass, 1 = apply pass
    i = pl.program_id(1)   # tile index along M

    @pl.when((p == 0) & (i == 0))
    def _():
        sum_ref[...] = jnp.zeros_like(sum_ref)
        sumsq_ref[...] = jnp.zeros_like(sumsq_ref)

    # Conv-as-matmul on the MXU with f32 accumulation. Recomputed in pass 1:
    # cheaper than writing + re-reading the f32 pre-BN activations through HBM.
    y = jnp.dot(xcol_ref[...], w_ref[...], preferred_element_type=jnp.float32)

    @pl.when(p == 0)
    def _():
        sum_ref[...] += jnp.sum(y, axis=0, keepdims=True)
        sumsq_ref[...] += jnp.sum(y * y, axis=0, keepdims=True)

    @pl.when((p == 1) & (i == 0))
    def _():
        inv_m = 1.0 / m
        mean = sum_ref[...] * inv_m
        var = jnp.maximum(sumsq_ref[...] * inv_m - mean * mean, 0.0)  # biased batch var
        scale = g_ref[...] * jax.lax.rsqrt(var + eps)
        scale_ref[...] = scale
        shift_ref[...] = b_ref[...] - mean * scale

    @pl.when(p == 1)
    def _():
        o_ref[...] = jnp.maximum(
            y * scale_ref[...] + shift_ref[...], 0.0).astype(o_ref.dtype)


# ------------------------------- wrappers ---------------------------------- #

def _pick_tile_m(m):
    for t in (1024, 512, 256, 128, 64, 32, 16, 8):
        if m % t == 0:
            return t
    return m


def im2col_nhwc(x_nhwc, k, pad):
    """(N, H, W, C) -> (N*H*W, K*K*C), stride 1, column order (kh, kw, cin)."""
    n, h, w, c = x_nhwc.shape
    xp = jnp.pad(x_nhwc, ((0, 0), (pad, pad), (pad, pad), (0, 0)))
    cols = [xp[:, dh:dh + h, dw:dw + w, :] for dh in range(k) for dw in range(k)]
    return jnp.concatenate(cols, axis=-1).reshape(n * h * w, k * k * c)


def conv_bn_relu_nhwc(x_nhwc, weight, gamma, beta, *, eps=EPS, out_dtype=jnp.float32):
    """One ConvBlock (3x3 s1 p1 conv + training-mode BN + ReLU) in NHWC."""
    n, h, w, cin = x_nhwc.shape
    cout, _, k, _ = weight.shape
    m = n * h * w
    ckk = cin * k * k
    tm = _pick_tile_m(m)
    grid_m = m // tm

    # TODO(synk): fuse the im2col (halo row-tiles over NHWC) into the kernel to
    # avoid the 9x XLA-side materialization of the input.
    xcol = im2col_nhwc(x_nhwc.astype(jnp.bfloat16), k, k // 2)          # (M, CKK) bf16

    # (Cout, Cin, kh, kw) -> (kh, kw, cin) x cout; un-padded (last dims equal
    # full array dims, so the (8,128) block rule is satisfied without padding
    # and we avoid writing padded lanes to HBM).
    w_mat = jnp.transpose(weight, (2, 3, 1, 0)).reshape(ckk, cout).astype(jnp.bfloat16)
    g_row = gamma.reshape(1, cout).astype(jnp.float32)
    b_row = beta.reshape(1, cout).astype(jnp.float32)

    out_bytes = jnp.dtype(out_dtype).itemsize
    cost = pl.CostEstimate(
        flops=int(2 * 2 * m * ckk * cout), transcendentals=0,
        bytes_accessed=int(2 * m * ckk * 2 + ckk * cout * 2 + m * cout * out_bytes))

    kernel = functools.partial(conv_bn_relu_kernel, m=m, eps=eps)

    out = pl.pallas_call(
        kernel,
        out_shape=jax.ShapeDtypeStruct((m, cout), out_dtype),
        grid=(2, grid_m),
        in_specs=[pl.BlockSpec((tm, ckk), lambda p, i: (i, 0)),
                  pl.BlockSpec((ckk, cout), lambda p, i: (0, 0)),   # weights resident
                  pl.BlockSpec((1, cout), lambda p, i: (0, 0)),
                  pl.BlockSpec((1, cout), lambda p, i: (0, 0))],
        # Pass-0 iterations all alias output block 0; it is only flushed to HBM
        # after pass 1 overwrites it, so every output block is written exactly once.
        out_specs=pl.BlockSpec((tm, cout), lambda p, i: (i * p, 0)),
        scratch_shapes=[pltpu.VMEM((1, cout), jnp.float32),   # sum
                        pltpu.VMEM((1, cout), jnp.float32),   # sum of squares
                        pltpu.VMEM((1, cout), jnp.float32),   # BN scale
                        pltpu.VMEM((1, cout), jnp.float32)],  # BN shift
        compiler_params=pltpu.CompilerParams(
            dimension_semantics=("arbitrary", "arbitrary"),
            vmem_limit_bytes=32 * 1024 * 1024),
        cost_estimate=cost,
    )(xcol, w_mat, g_row, b_row)

    return out.reshape(n, h, w, cout)


def conv_block3_pallas(x_nchw, params):
    """ConvBlock3 forward. x_nchw: (N, Cin, H, W); params: 3x (weight, bias, gamma, beta)."""
    x = jnp.transpose(x_nchw, (0, 2, 3, 1))                   # NHWC between layers
    n_layers = len(params)
    for li, (weight, _bias, gamma, beta) in enumerate(params):
        # Conv bias is intentionally unused: training-mode BN's mean subtraction
        # cancels it exactly, so skipping it is mathematically equivalent.
        out_dtype = jnp.float32 if li == n_layers - 1 else jnp.bfloat16
        x = conv_bn_relu_nhwc(x, weight, gamma, beta, out_dtype=out_dtype)
    return jnp.transpose(x, (0, 3, 1, 2))


# ------------------------------- reference --------------------------------- #

def _conv_bn_relu_reference(x, weight, bias, gamma, beta, eps=EPS):
    y = jax.lax.conv_general_dilated(
        x, weight, window_strides=(1, 1), padding=((1, 1), (1, 1)),
        dimension_numbers=("NCHW", "OIHW", "NCHW"))
    y = y + bias.reshape(1, -1, 1, 1)
    mean = jnp.mean(y, axis=(0, 2, 3), keepdims=True)
    var = jnp.mean((y - mean) ** 2, axis=(0, 2, 3), keepdims=True)
    y_hat = (y - mean) * jax.lax.rsqrt(var + eps)
    return jnp.maximum(y_hat * gamma.reshape(1, -1, 1, 1) + beta.reshape(1, -1, 1, 1), 0.0)


def conv_block3_reference(x, params):
    for (w, b, g, be) in params:
        x = _conv_bn_relu_reference(x, w, b, g, be)
    return x


# --------------------------------- main ------------------------------------ #

if __name__ == "__main__":
    N, C_in, H, W = 2, 4, 16, 16
    C_mid, C_out = 8, 8
    K = 3

    key = jax.random.PRNGKey(0)
    params = []
    for (ci, co) in ((C_in, C_mid), (C_mid, C_mid), (C_mid, C_out)):
        key, kw_, kb_ = jax.random.split(key, 3)
        fan_in = ci * K * K
        bound = 1.0 / (fan_in ** 0.5)
        w = jax.random.uniform(kw_, (co, ci, K, K), jnp.float32, -bound, bound)
        b = jax.random.uniform(kb_, (co,), jnp.float32, -bound, bound)
        g = jnp.ones((co,), jnp.float32)     # BN weight default
        be = jnp.zeros((co,), jnp.float32)   # BN bias default
        params.append((w, b, g, be))

    key, kx = jax.random.split(key)
    x = jax.random.normal(kx, (N, C_in, H, W), dtype=jnp.float32)

    out = jax.block_until_ready(conv_block3_pallas(x, params))
    ref = jax.block_until_ready(conv_block3_reference(x, params))

    assert out.shape == (N, C_out, H, W), f"bad output shape {out.shape}"
    assert jnp.allclose(out, ref, rtol=5e-2, atol=5e-2), (
        "mismatch vs reference, max abs err = "
        f"{float(jnp.max(jnp.abs(out - ref)))}")

    print("KERNEL_OK")
</pallas_src>

<mosaic_0001>
module attributes {stable_mosaic.version = 11 : i64} {
  func.func @conv_bn_relu_kernel(%arg0: i32, %arg1: i32, %arg2: memref<512x36xbf16, #tpu.memory_space<vmem>>, %arg3: memref<36x8xbf16, #tpu.memory_space<vmem>>, %arg4: memref<1x8xf32, #tpu.memory_space<vmem>>, %arg5: memref<1x8xf32, #tpu.memory_space<vmem>>, %arg6: memref<512x8xbf16, #tpu.memory_space<vmem>>, %arg7: memref<1x8xf32, #tpu.memory_space<vmem>>, %arg8: memref<1x8xf32, #tpu.memory_space<vmem>>, %arg9: memref<1x8xf32, #tpu.memory_space<vmem>>, %arg10: memref<1x8xf32, #tpu.memory_space<vmem>>) attributes {dimension_semantics = [#tpu.dimension_semantics<arbitrary>, #tpu.dimension_semantics<arbitrary>], iteration_bounds = array<i64: 2, 1>, scalar_prefetch = 0 : i64, scratch_operands = 4 : i64, tpu.core_type = #tpu.core_type<tc>, window_params = [{transform_indices = @transform_0, window_bounds = array<i64: 512, 36>}, {pipeline_mode = #tpu.pipeline_mode<synchronous>, transform_indices = @transform_1, window_bounds = array<i64: 36, 8>}, {pipeline_mode = #tpu.pipeline_mode<synchronous>, transform_indices = @transform_2, window_bounds = array<i64: 1, 8>}, {pipeline_mode = #tpu.pipeline_mode<synchronous>, transform_indices = @transform_3, window_bounds = array<i64: 1, 8>}, {transform_indices = @transform_4, window_bounds = array<i64: 512, 8>}]} {
    %c0_i32 = arith.constant 0 : i32
    %0 = arith.cmpi eq, %arg0, %c0_i32 : i32
    %c0_i32_0 = arith.constant 0 : i32
    %1 = arith.cmpi eq, %arg1, %c0_i32_0 : i32
    %2 = arith.andi %0, %1 : i1
    %3 = arith.extui %2 : i1 to i32
    %c0_i32_1 = arith.constant 0 : i32
    %4 = arith.cmpi ne, %3, %c0_i32_1 : i32
    scf.if %4 {
      %cst_11 = arith.constant 0.000000e+00 : f32
      %19 = vector.broadcast %cst_11 : f32 to vector<1x8xf32>
      %c0_12 = arith.constant 0 : index
      %c0_13 = arith.constant 0 : index
      %20 = vector.load %arg7[%c0_12, %c0_13] : memref<1x8xf32, #tpu.memory_space<vmem>>, vector<1x8xf32>
      tpu.vector_store %arg7[%c0_12, %c0_13], %19 {strides = array<i32>} : memref<1x8xf32, #tpu.memory_space<vmem>>, vector<1x8xf32>,
      %cst_14 = arith.constant 0.000000e+00 : f32
      %21 = vector.broadcast %cst_14 : f32 to vector<1x8xf32>
      %c0_15 = arith.constant 0 : index
      %c0_16 = arith.constant 0 : index
      %22 = vector.load %arg8[%c0_15, %c0_16] : memref<1x8xf32, #tpu.memory_space<vmem>>, vector<1x8xf32>
      tpu.vector_store %arg8[%c0_15, %c0_16], %21 {strides = array<i32>} : memref<1x8xf32, #tpu.memory_space<vmem>>, vector<1x8xf32>,
    } else {
    }
    %c0 = arith.constant 0 : index
    %c0_2 = arith.constant 0 : index
    %5 = vector.load %arg2[%c0, %c0_2] : memref<512x36xbf16, #tpu.memory_space<vmem>>, vector<512x36xbf16>
    %c0_3 = arith.constant 0 : index
    %c0_4 = arith.constant 0 : index
    %6 = vector.load %arg3[%c0_3, %c0_4] : memref<36x8xbf16, #tpu.memory_space<vmem>>, vector<36x8xbf16>
    %cst = arith.constant dense<0.000000e+00> : vector<512x8xf32>
    %7 = tpu.matmul %5, %6, %cst {dimension_numbers = #tpu.dot_dimension_numbers<[1], [0], [0], [1], [0, 0, 1, 1], [], []>} : vector<512x36xbf16>, vector<36x8xbf16>, vector<512x8xf32> -> vector<512x8xf32>
    %c0_i32_5 = arith.constant 0 : i32
    %8 = arith.cmpi eq, %arg0, %c0_i32_5 : i32
    %9 = arith.extui %8 : i1 to i32
    %c0_i32_6 = arith.constant 0 : i32
    %10 = arith.cmpi ne, %9, %c0_i32_6 : i32
    scf.if %10 {
      %c0_11 = arith.constant 0 : index
      %c0_12 = arith.constant 0 : index
      %19 = vector.load %arg7[%c0_11, %c0_12] : memref<1x8xf32, #tpu.memory_space<vmem>>, vector<1x8xf32>
      %cst_13 = arith.constant dense<0.000000e+00> : vector<8xf32>
      %20 = vector.multi_reduction <add>, %7, %cst_13 [0] : vector<512x8xf32> to vector<8xf32>
      %21 = vector.shape_cast %20 : vector<8xf32> to vector<1x8xf32>
      %22 = arith.addf %19, %21 : vector<1x8xf32>
      %c0_14 = arith.constant 0 : index
      %c0_15 = arith.constant 0 : index
      %23 = vector.load %arg7[%c0_14, %c0_15] : memref<1x8xf32, #tpu.memory_space<vmem>>, vector<1x8xf32>
      tpu.vector_store %arg7[%c0_14, %c0_15], %22 {strides = array<i32>} : memref<1x8xf32, #tpu.memory_space<vmem>>, vector<1x8xf32>,
      %c0_16 = arith.constant 0 : index
      %c0_17 = arith.constant 0 : index
      %24 = vector.load %arg8[%c0_16, %c0_17] : memref<1x8xf32, #tpu.memory_space<vmem>>, vector<1x8xf32>
      %25 = arith.mulf %7, %7 : vector<512x8xf32>
      %cst_18 = arith.constant dense<0.000000e+00> : vector<8xf32>
      %26 = vector.multi_reduction <add>, %25, %cst_18 [0] : vector<512x8xf32> to vector<8xf32>
      %27 = vector.shape_cast %26 : vector<8xf32> to vector<1x8xf32>
      %28 = arith.addf %24, %27 : vector<1x8xf32>
      %c0_19 = arith.constant 0 : index
      %c0_20 = arith.constant 0 : index
      %29 = vector.load %arg8[%c0_19, %c0_20] : memref<1x8xf32, #tpu.memory_space<vmem>>, vector<1x8xf32>
      tpu.vector_store %arg8[%c0_19, %c0_20], %28 {strides = array<i32>} : memref<1x8xf32, #tpu.memory_space<vmem>>, vector<1x8xf32>,
    } else {
    }
    %c1_i32 = arith.constant 1 : i32
    %11 = arith.cmpi eq, %arg0, %c1_i32 : i32
    %c0_i32_7 = arith.constant 0 : i32
    %12 = arith.cmpi eq, %arg1, %c0_i32_7 : i32
    %13 = arith.andi %11, %12 : i1
    %14 = arith.extui %13 : i1 to i32
    %c0_i32_8 = arith.constant 0 : i32
    %15 = arith.cmpi ne, %14, %c0_i32_8 : i32
    scf.if %15 {
      %c0_11 = arith.constant 0 : index
      %c0_12 = arith.constant 0 : index
      %19 = vector.load %arg7[%c0_11, %c0_12] : memref<1x8xf32, #tpu.memory_space<vmem>>, vector<1x8xf32>
      %cst_13 = arith.constant 0.001953125 : f32
      %20 = vector.broadcast %cst_13 : f32 to vector<1x8xf32>
      %21 = arith.mulf %19, %20 : vector<1x8xf32>
      %c0_14 = arith.constant 0 : index
      %c0_15 = arith.constant 0 : index
      %22 = vector.load %arg8[%c0_14, %c0_15] : memref<1x8xf32, #tpu.memory_space<vmem>>, vector<1x8xf32>
      %cst_16 = arith.constant 0.001953125 : f32
      %23 = vector.broadcast %cst_16 : f32 to vector<1x8xf32>
      %24 = arith.mulf %22, %23 : vector<1x8xf32>
      %25 = arith.mulf %21, %21 : vector<1x8xf32>
      %26 = arith.subf %24, %25 : vector<1x8xf32>
      %cst_17 = arith.constant 0.000000e+00 : f32
      %27 = vector.broadcast %cst_17 : f32 to vector<1x8xf32>
      %28 = arith.maximumf %26, %27 : vector<1x8xf32>
      %c0_18 = arith.constant 0 : index
      %c0_19 = arith.constant 0 : index
      %29 = vector.load %arg4[%c0_18, %c0_19] : memref<1x8xf32, #tpu.memory_space<vmem>>, vector<1x8xf32>
      %cst_20 = arith.constant 9.99999974E-6 : f32
      %30 = vector.broadcast %cst_20 : f32 to vector<1x8xf32>
      %31 = arith.addf %28, %30 : vector<1x8xf32>
      %32 = math.rsqrt %31 : vector<1x8xf32>
      %33 = arith.mulf %29, %32 : vector<1x8xf32>
      %c0_21 = arith.constant 0 : index
      %c0_22 = arith.constant 0 : index
      %34 = vector.load %arg9[%c0_21, %c0_22] : memref<1x8xf32, #tpu.memory_space<vmem>>, vector<1x8xf32>
      tpu.vector_store %arg9[%c0_21, %c0_22], %33 {strides = array<i32>} : memref<1x8xf32, #tpu.memory_space<vmem>>, vector<1x8xf32>,
      %c0_23 = arith.constant 0 : index
      %c0_24 = arith.constant 0 : index
      %35 = vector.load %arg5[%c0_23, %c0_24] : memref<1x8xf32, #tpu.memory_space<vmem>>, vector<1x8xf32>
      %36 = arith.mulf %21, %33 : vector<1x8xf32>
      %37 = arith.subf %35, %36 : vector<1x8xf32>
      %c0_25 = arith.constant 0 : index
      %c0_26 = arith.constant 0 : index
      %38 = vector.load %arg10[%c0_25, %c0_26] : memref<1x8xf32, #tpu.memory_space<vmem>>, vector<1x8xf32>
      tpu.vector_store %arg10[%c0_25, %c0_26], %37 {strides = array<i32>} : memref<1x8xf32, #tpu.memory_space<vmem>>, vector<1x8xf32>,
    } else {
    }
    %c1_i32_9 = arith.constant 1 : i32
    %16 = arith.cmpi eq, %arg0, %c1_i32_9 : i32
    %17 = arith.extui %16 : i1 to i32
    %c0_i32_10 = arith.constant 0 : i32
    %18 = arith.cmpi ne, %17, %c0_i32_10 : i32
    scf.if %18 {
      %c0_11 = arith.constant 0 : index
      %c0_12 = arith.constant 0 : index
      %19 = vector.load %arg9[%c0_11, %c0_12] : memref<1x8xf32, #tpu.memory_space<vmem>>, vector<1x8xf32>
      %20 = vector.broadcast %19 : vector<1x8xf32> to vector<512x8xf32>
      %21 = arith.mulf %7, %20 : vector<512x8xf32>
      %c0_13 = arith.constant 0 : index
      %c0_14 = arith.constant 0 : index
      %22 = vector.load %arg10[%c0_13, %c0_14] : memref<1x8xf32, #tpu.memory_space<vmem>>, vector<1x8xf32>
      %23 = vector.broadcast %22 : vector<1x8xf32> to vector<512x8xf32>
      %24 = arith.addf %21, %23 : vector<512x8xf32>
      %cst_15 = arith.constant 0.000000e+00 : f32
      %25 = vector.broadcast %cst_15 : f32 to vector<512x8xf32>
      %26 = arith.maximumf %24, %25 : vector<512x8xf32>
      %27 = arith.truncf %26 : vector<512x8xf32> to vector<512x8xbf16>
      %c0_16 = arith.constant 0 : index
      %c0_17 = arith.constant 0 : index
      %28 = vector.load %arg6[%c0_16, %c0_17] : memref<512x8xbf16, #tpu.memory_space<vmem>>, vector<512x8xbf16>
      tpu.vector_store %arg6[%c0_16, %c0_17], %27 {strides = array<i32>} : memref<512x8xbf16, #tpu.memory_space<vmem>>, vector<512x8xbf16>,
    } else {
    }
    return
  }
  func.func @transform_0(%arg0: i32, %arg1: i32) -> (i32, i32) {
    %c0_i32 = arith.constant 0 : i32
    %c0_i32_0 = arith.constant 0 : i32
    return %arg1, %c0_i32 : i32, i32
  }
  func.func @transform_1(%arg0: i32, %arg1: i32) -> (i32, i32) {
    %c0_i32 = arith.constant 0 : i32
    %c0_i32_0 = arith.constant 0 : i32
    %c0_i32_1 = arith.constant 0 : i32
    return %c0_i32, %c0_i32_0 : i32, i32
  }
  func.func @transform_2(%arg0: i32, %arg1: i32) -> (i32, i32) {
    %c0_i32 = arith.constant 0 : i32
    %c0_i32_0 = arith.constant 0 : i32
    %c0_i32_1 = arith.constant 0 : i32
    return %c0_i32, %c0_i32_0 : i32, i32
  }
  func.func @transform_3(%arg0: i32, %arg1: i32) -> (i32, i32) {
    %c0_i32 = arith.constant 0 : i32
    %c0_i32_0 = arith.constant 0 : i32
    %c0_i32_1 = arith.constant 0 : i32
    return %c0_i32, %c0_i32_0 : i32, i32
  }
  func.func @transform_4(%arg0: i32, %arg1: i32) -> (i32, i32) {
    %0 = arith.muli %arg1, %arg0 : i32
    %c0_i32 = arith.constant 0 : i32
    %c0_i32_0 = arith.constant 0 : i32
    return %0, %c0_i32 : i32, i32
  }
}

</mosaic_0001>

<bundles_post_ra>
// kernel: tpu_custom_call.1
= control target key start
LH: loop header
LB: loop body
LE: loop exit
PB: predicated region body
PF: predicated region fallthrough
CT: control target
= control target key end

     0   :  { %s2263_s15 = smov 0   ;;  %s2265_s16 = smov 0   ;;  %s3341_s0 = inlined_call_operand.vmem [shape: bf16[512,36], index: 0, kind: input, shape index: {}]   ;;  %s3342_s1 = inlined_call_operand.vmem [shape: bf16[36,8], index: 1, kind: input, shape index: {}]   ;;  %s3343_s2 = inlined_call_operand.vmem [shape: f32[1,8], index: 2, kind: input, shape index: {}]   ;;  %s3344_s3 = inlined_call_operand.vmem [shape: f32[1,8], index: 3, kind: input, shape index: {}]   ;;  %s3345_s4 = inlined_call_operand.vmem [shape: bf16[512,8], index: 4, kind: output, shape index: {}]  }
   0x1   :  { %s2267_s17 = smov 0  }
   0x2 LB: > { %s26_s18 = sadd.s32 1, %s2231_s16  ;;  %p1830_p0 = scmp.ge.s32.totalorder %s2235_s17, 1  ;;  %s2235_s17 = sphi %s2267_s17, %s14_s17   ;;  %s2231_s16 = sphi %s2265_s16, %s3463_s16   ;;  %s2227_s15 = sphi %s2263_s15, %s3462_s15  }
   0x3   : > { %p28_p1 = scmp.ge.s32.totalorder %s26_s18, 2  ;;  %p177_p2 = scmp.lt.s32.totalorder %s2235_s17, 3 }
   0x5   : > { %s3465_s18 = smov (%p28_p1, %s26_s18), 0  ;;  %p178_p3 = pnand %p1830_p0, %p177_p2 }
   0x7   : > { %181 = sbr.rel (%p178_p3) target bundleno = 581 (0x245), region = 36 }
   0xc   : > { %p219_p4 = scmp.eq.s32.totalorder %s2227_s15, 0 }
   0xd   : > { %vm225_vm0 = vcmask (%p219_p4), 57344   ;;  %v2237_v0 = vmov (%p219_p4), 0.0  }
   0xe   : > { %224 = sbr.rel (!%p219_p4) target bundleno = 19 (0x13), region = 40  ;;  %226 = vst.msk [vmem:[#allocation2] sm:$0x1] (%p219_p4), %vm225_vm0, %v2237_v0  ;;  %227 = vst.msk [vmem:[#allocation3] sm:$0x1] (%p219_p4), %vm225_vm0, %v2237_v0 }
  0x13 PF: > { %v2176_v1 = vld [vmem:[%s3342_s1 + $0x10] ss:$0 sps:$4 sm:$0x33]   ;;  %vm569_vm1 = vcmask 1041408   ;;  %v2177_v2 = vld [vmem:[%s3342_s1 + $0x8] sm:$0xff]   ;;  %vm472_vm2 = vcmask 293888  }
  0x14   : > { %2149 = vmatprep.subr.msk.bf16.mxu0 %vm569_vm1, %v2176_v1  ;;  %2150 = vmatprep.subr.msk.bf16.mxu1 %vm569_vm1, %v2176_v1  ;;  %v571_v3 = vsel %vm569_vm1, %v2176_v1, 0  ;;  %v2178_v4 = vld [vmem:[%s3342_s1] sm:$0xff]   ;;  %v2181_v7 = vld [vmem:[%s3341_s0 + $0x8] sm:$0xff]   ;;  %v2183_v9 = vld [vmem:[%s3341_s0 + $0x10] sm:$0xff]   ;;  %p1899_p5 = scmp.ne.s32.totalorder %s2227_s15, 0 }
  0x15   : > { %2074 = vmatpush3.bf16.msra.mxu0 %v571_v3  ;;  %2146 = vmatpush3.bf16.msra.mxu1 %v571_v3  ;;  %v2179_v5 = vld [vmem:[%s3341_s0] sm:$0xff]   ;;  %v2182_v8 = vld [vmem:[%s3341_s0 + $0x88] sm:$0xff]   ;;  %v2184_v10 = vld [vmem:[%s3341_s0 + $0x90] sm:$0xff]  }
  0x16   : > { %2075 = vmatprep.subr.bf16.mxu0 %v2177_v2  ;;  %2144 = vmatprep.subr.bf16.mxu1 %v2177_v2  ;;  %v2180_v6 = vld [vmem:[%s3341_s0 + $0x80] sm:$0xff]   ;;  %v2185_v11 = vld [vmem:[%s3341_s0 + $0x18] sm:$0xff]   ;;  %v2189_v15 = vld [vmem:[%s3341_s0 + $0x28] sm:$0xff]  }
  0x17   : > { %2079 = vmatprep.mubr.msk.bf16.mxu0 %vm472_vm2, %v2179_v5  ;;  %2111 = vmatprep.mubr.msk.bf16.mxu1 %vm472_vm2, %v2180_v6  ;;  %v2186_v12 = vld [vmem:[%s3341_s0 + $0x98] sm:$0xff]   ;;  %v2187_v13 = vld [vmem:[%s3341_s0 + $0x20] sm:$0xff]   ;;  %v2190_v16 = vld [vmem:[%s3341_s0 + $0xa8] sm:$0xff]  }
  0x18   : > { %v2188_v14 = vld [vmem:[%s3341_s0 + $0xa0] sm:$0xff]   ;;  %v2191_v17 = vld [vmem:[%s3341_s0 + $0x30] sm:$0xff]   ;;  %v2193_v19 = vld [vmem:[%s3341_s0 + $0x38] sm:$0xff]  }
  0x19   : > { %2076 = vmatpush3.bf16.msra.mxu0 %v2177_v2  ;;  %2147 = vmatpush3.bf16.msra.mxu1 %v2177_v2  ;;  %v2192_v18 = vld [vmem:[%s3341_s0 + $0xb0] sm:$0xff]   ;;  %v2194_v20 = vld [vmem:[%s3341_s0 + $0xb8] sm:$0xff]   ;;  %v2195_v21 = vld [vmem:[%s3341_s0 + $0x40] sm:$0xff]  }
  0x1a   : > { %2077 = vmatprep.subr.bf16.mxu0 %v2178_v4  ;;  %2145 = vmatprep.subr.bf16.mxu1 %v2178_v4  ;;  %v2196_v22 = vld [vmem:[%s3341_s0 + $0xc0] sm:$0xff]   ;;  %v2197_v23 = vld [vmem:[%s3341_s0 + $0x48] sm:$0xff]   ;;  %v2199_v25 = vld [vmem:[%s3341_s0 + $0x50] sm:$0xff]  }
  0x1b   : > { %v2198_v24 = vld [vmem:[%s3341_s0 + $0xc8] sm:$0xff]   ;;  %v2200_v26 = vld [vmem:[%s3341_s0 + $0xd0] sm:$0xff]   ;;  %v2201_v27 = vld [vmem:[%s3341_s0 + $0x58] sm:$0xff]  }
  0x1c   : > { %v2202_v28 = vld [vmem:[%s3341_s0 + $0xd8] sm:$0xff]   ;;  %v2203_v29 = vld [vmem:[%s3341_s0 + $0x60] sm:$0xff]   ;;  %v2205_v31 = vld [vmem:[%s3341_s0 + $0x68] sm:$0xff]  }
  0x1d   : > { %2078 = vmatpush3.bf16.msra.mxu0 %v2178_v4  ;;  %2148 = vmatpush3.bf16.msra.mxu1 %v2178_v4  ;;  %v2204_v30 = vld [vmem:[%s3341_s0 + $0xe0] sm:$0xff]   ;;  %v2206_v32 = vld [vmem:[%s3341_s0 + $0xe8] sm:$0xff]   ;;  %v2207_v33 = vld [vmem:[%s3341_s0 + $0x70] sm:$0xff]  }
  0x1e   : > { %v2208_v34 = vld [vmem:[%s3341_s0 + $0xf0] sm:$0xff]   ;;  %v2209_v35 = vld [vmem:[%s3341_s0 + $0x78] sm:$0xff]  }
  0x1f   : > { %v2210_v36 = vld [vmem:[%s3341_s0 + $0xf8] sm:$0xff]  }
  0x20   : > { %2080 = vmatmul.mubr.msk.bf16.vlgmr.msra.gmra.mxu0 %vm472_vm2, %v2181_v7  ;;  %2112 = vmatmul.mubr.msk.bf16.vlgmr.msra.gmra.mxu1 %vm472_vm2, %v2182_v8 }
  0x21   : > { %2083 = vmatprep.mubr.msk.bf16.mxu0 %vm472_vm2, %v2183_v9  ;;  %2115 = vmatprep.mubr.msk.bf16.mxu1 %vm472_vm2, %v2184_v10 }
  0x28   : > { %2084 = vmatmul.mubr.msk.bf16.gmra.mxu0 %vm472_vm2, %v2185_v11  ;;  %2116 = vmatmul.mubr.msk.bf16.gmra.mxu1 %vm472_vm2, %v2186_v12 }
  0x29   : > { %2087 = vmatprep.mubr.msk.bf16.mxu0 %vm472_vm2, %v2187_v13  ;;  %2119 = vmatprep.mubr.msk.bf16.mxu1 %vm472_vm2, %v2188_v14 }
  0x30   : > { %2088 = vmatmul.mubr.msk.bf16.gmra.mxu0 %vm472_vm2, %v2189_v15  ;;  %2120 = vmatmul.mubr.msk.bf16.gmra.mxu1 %vm472_vm2, %v2190_v16 }
  0x31   : > { %2091 = vmatprep.mubr.msk.bf16.mxu0 %vm472_vm2, %v2191_v17  ;;  %2123 = vmatprep.mubr.msk.bf16.mxu1 %vm472_vm2, %v2192_v18 }
  0x38   : > { %2092 = vmatmul.mubr.msk.bf16.gmra.mxu0 %vm472_vm2, %v2193_v19  ;;  %2124 = vmatmul.mubr.msk.bf16.gmra.mxu1 %vm472_vm2, %v2194_v20 }
  0x39   : > { %2095 = vmatprep.mubr.msk.bf16.mxu0 %vm472_vm2, %v2195_v21  ;;  %2127 = vmatprep.mubr.msk.bf16.mxu1 %vm472_vm2, %v2196_v22 }
  0x40   : > { %2096 = vmatmul.mubr.msk.bf16.gmra.mxu0 %vm472_vm2, %v2197_v23  ;;  %2128 = vmatmul.mubr.msk.bf16.gmra.mxu1 %vm472_vm2, %v2198_v24 }
  0x41   : > { %2099 = vmatprep.mubr.msk.bf16.mxu0 %vm472_vm2, %v2199_v25  ;;  %2131 = vmatprep.mubr.msk.bf16.mxu1 %vm472_vm2, %v2200_v26 }
  0x48   : > { %2100 = vmatmul.mubr.msk.bf16.gmra.mxu0 %vm472_vm2, %v2201_v27  ;;  %2132 = vmatmul.mubr.msk.bf16.gmra.mxu1 %vm472_vm2, %v2202_v28 }
  0x49   : > { %2103 = vmatprep.mubr.msk.bf16.mxu0 %vm472_vm2, %v2203_v29  ;;  %2135 = vmatprep.mubr.msk.bf16.mxu1 %vm472_vm2, %v2204_v30 }
  0x50   : > { %2104 = vmatmul.mubr.msk.bf16.gmra.mxu0 %vm472_vm2, %v2205_v31  ;;  %2136 = vmatmul.mubr.msk.bf16.gmra.mxu1 %vm472_vm2, %v2206_v32 }
  0x51   : > { %2107 = vmatprep.mubr.msk.bf16.mxu0 %vm472_vm2, %v2207_v33  ;;  %2139 = vmatprep.mubr.msk.bf16.mxu1 %vm472_vm2, %v2208_v34 }
  0x58   : > { %2108 = vmatmul.mubr.msk.bf16.gmra.mxu0 %vm472_vm2, %v2209_v35  ;;  %2140 = vmatmul.mubr.msk.bf16.gmra.mxu1 %vm472_vm2, %v2210_v36 }
  0xe0   : > { %v2421_v37 = vpop.f32.mrf.mxu0  ;;  %v2423_v38 = vpop.f32.mrf.mxu1 }
  0xe1   : > { %3380 = vst [vmem:[#allocation6_spill] sm:$0xff] %v2421_v37  ;;  %3381 = vst [vmem:[#allocation7_spill] sm:$0xff] %v2423_v38 }
  0xe2   : > { %v2425_v39 = vpop.f32.mrf.mxu0  ;;  %v2427_v40 = vpop.f32.mrf.mxu1 }
  0xe3   : > { %3382 = vst [vmem:[#allocation8_spill] sm:$0xff] %v2425_v39  ;;  %3383 = vst [vmem:[#allocation9_spill] sm:$0xff] %v2427_v40 }
  0xe4   : > { %v2429_v41 = vpop.f32.mrf.mxu0  ;;  %v2431_v42 = vpop.f32.mrf.mxu1 }
  0xe5   : > { %3384 = vst [vmem:[#allocation10_spill] sm:$0xff] %v2429_v41  ;;  %3385 = vst [vmem:[#allocation11_spill] sm:$0xff] %v2431_v42 }
  0xe6   : > { %v2433_v43 = vpop.f32.mrf.mxu0  ;;  %v2435_v44 = vpop.f32.mrf.mxu1 }
  0xe7   : > { %3386 = vst [vmem:[#allocation12_spill] sm:$0xff] %v2433_v43  ;;  %3387 = vst [vmem:[#allocation13_spill] sm:$0xff] %v2435_v44 }
  0xe8   : > { %v2437_v45 = vpop.f32.mrf.mxu0  ;;  %v2439_v46 = vpop.f32.mrf.mxu1 }
  0xe9   : > { %3388 = vst [vmem:[#allocation14_spill] sm:$0xff] %v2439_v46 }
  0xea   : > { %v2441_v47 = vpop.f32.mrf.mxu0  ;;  %v2443_v48 = vpop.f32.mrf.mxu1 }
  0xeb   : > { %3389 = vst [vmem:[#allocation15_spill] sm:$0xff] %v2441_v47  ;;  %3390 = vst [vmem:[#allocation16_spill] sm:$0xff] %v2443_v48 }
  0xec   : > { %v2445_v49 = vpop.f32.mrf.mxu0  ;;  %v2447_v50 = vpop.f32.mrf.mxu1 }
  0xed   : > { %3391 = vst [vmem:[#allocation17_spill] sm:$0xff] %v2447_v50 }
  0xee   : > { %v2449_v51 = vpop.f32.mrf.mxu0  ;;  %v2451_v52 = vpop.f32.mrf.mxu1 }
  0xef   : > { %3392 = vst [vmem:[#allocation18_spill] sm:$0xff] %v2451_v52 }
  0xf0   : > { %v2453_v53 = vpop.f32.mrf.mxu0  ;;  %v2455_v54 = vpop.f32.mrf.mxu1 }
  0xf1   : > { %3393 = vst [vmem:[#allocation19_spill] sm:$0xff] %v2455_v54 }
  0xf2   : > { %v2457_v55 = vpop.f32.mrf.mxu0  ;;  %v2459_v56 = vpop.f32.mrf.mxu1 }
  0xf3   : > { %3394 = vst [vmem:[#allocation20_spill] sm:$0xff] %v2459_v56 }
  0xf4   : > { %v2461_v57 = vpop.f32.mrf.mxu0  ;;  %v2463_v58 = vpop.f32.mrf.mxu1 }
  0xf5   : > { %3395 = vst [vmem:[#allocation21_spill] sm:$0xff] %v2463_v58 }
  0xf6   : > { %v2465_v59 = vpop.f32.mrf.mxu0  ;;  %v2467_v60 = vpop.f32.mrf.mxu1 }
  0xf7   : > { %3396 = vst [vmem:[#allocation22_spill] sm:$0xff] %v2467_v60 }
  0xf8   : > { %v2469_v61 = vpop.f32.mrf.mxu0  ;;  %v2471_v62 = vpop.f32.mrf.mxu1 }
  0xf9   : > { %3397 = vst [vmem:[#allocation23_spill] sm:$0xff] %v2471_v62 }
  0xfa   : > { %v2473_v63 = vpop.f32.mrf.mxu0  ;;  %v2475_v0 = vpop.f32.mrf.mxu1 }
  0xfb   : > { %3398 = vst [vmem:[#allocation24_spill] sm:$0xff] %v2475_v0 }
  0xfc   : > { %v2477_v1 = vpop.f32.mrf.mxu0  ;;  %v2479_v2 = vpop.f32.mrf.mxu1 }
  0xfe   : > { %v2481_v3 = vpop.f32.mrf.mxu0  ;;  %v2483_v4 = vpop.f32.mrf.mxu1 }
  0xff   : > { %3399 = vst [vmem:[#allocation25_spill] sm:$0xff] %v2483_v4 }
 0x100   : > { %v2485_v5 = vpop.f32.mrf.mxu0  ;;  %v2487_v6 = vpop.f32.mrf.mxu1 }
 0x101   : > { %3400 = vst [vmem:[#allocation26_spill] sm:$0xff] %v2487_v6 }
 0x102   : > { %v2489_v7 = vpop.f32.mrf.mxu0  ;;  %v2491_v8 = vpop.f32.mrf.mxu1 }
 0x104   : > { %v2493_v9 = vpop.f32.mrf.mxu0  ;;  %v2495_v10 = vpop.f32.mrf.mxu1 }
 0x105   : > { %3401 = vst [vmem:[#allocation27_spill] sm:$0xff] %v2495_v10 }
 0x106   : > { %v2497_v11 = vpop.f32.mrf.mxu0  ;;  %v2499_v12 = vpop.f32.mrf.mxu1 }
 0x108   : > { %v2501_v13 = vpop.f32.mrf.mxu0  ;;  %v2503_v14 = vpop.f32.mrf.mxu1 }
 0x109   : > { %3402 = vst [vmem:[#allocation28_spill] sm:$0xff] %v2503_v14 }
 0x10a   : > { %v2505_v15 = vpop.f32.mrf.mxu0  ;;  %v2507_v16 = vpop.f32.mrf.mxu1 }
 0x10b   : > { %3403 = vst [vmem:[#allocation29_spill] sm:$0xff] %v2507_v16 }
 0x10c   : > { %v2509_v17 = vpop.f32.mrf.mxu0  ;;  %v2511_v18 = vpop.f32.mrf.mxu1 }
 0x10d   : > { %3404 = vst [vmem:[#allocation30_spill] sm:$0xff] %v2511_v18 }
 0x10e   : > { %v2513_v19 = vpop.f32.mrf.mxu0  ;;  %v2515_v20 = vpop.f32.mrf.mxu1 }
 0x10f   : > { %3405 = vst [vmem:[#allocation31_spill] sm:$0xff] %v2515_v20 }
 0x110   : > { %v2517_v21 = vpop.f32.mrf.mxu0  ;;  %v2519_v22 = vpop.f32.mrf.mxu1 }
 0x111   : > { %3406 = vst [vmem:[#allocation32_spill] sm:$0xff] %v2519_v22 }
 0x112   : > { %v2521_v23 = vpop.f32.mrf.mxu0  ;;  %v2523_v24 = vpop.f32.mrf.mxu1 }
 0x113   : > { %3407 = vst [vmem:[#allocation33_spill] sm:$0xff] %v2523_v24 }
 0x114   : > { %v2525_v25 = vpop.f32.mrf.mxu0  ;;  %v2527_v26 = vpop.f32.mrf.mxu1 }
 0x115   : > { %3408 = vst [vmem:[#allocation34_spill] sm:$0xff] %v2527_v26 }
 0x116   : > { %v2529_v27 = vpop.f32.mrf.mxu0  ;;  %v2531_v28 = vpop.f32.mrf.mxu1 }
 0x117   : > { %3409 = vst [vmem:[#allocation35_spill] sm:$0xff] %v2531_v28 }
 0x118   : > { %v2533_v29 = vpop.f32.mrf.mxu0  ;;  %v2535_v30 = vpop.f32.mrf.mxu1 }
 0x119   : > { %3410 = vst [vmem:[#allocation36_spill] sm:$0xff] %v2535_v30 }
 0x11a   : > { %v2537_v31 = vpop.f32.mrf.mxu0  ;;  %v2539_v32 = vpop.f32.mrf.mxu1 }
 0x11b   : > { %3411 = vst [vmem:[#allocation37_spill] sm:$0xff] %v2539_v32  ;;  %864 = sbr.rel (%p1899_p5) target bundleno = 463 (0x1cf), region = 44 }
 0x11c   : > { %v2541_v33 = vpop.f32.mrf.mxu0  ;;  %v2543_v34 = vpop.f32.mrf.mxu1 }
 0x11d   : > { %3412 = vst [vmem:[#allocation38_spill] sm:$0xff] %v2543_v34 }
 0x11e   : > { %v2545_v35 = vpop.f32.mrf.mxu0  ;;  %v2547_v36 = vpop.f32.mrf.mxu1 }
 0x11f   : > { %3413 = vst [vmem:[#allocation39_spill] sm:$0xff] %v2547_v36 }
 0x120   : > { %vm866_vm3 = vcmask 64512   ;;  %vm1001_vm4 = vcmask 57344  }
 0x121   : > { %v867_v26 = vsel %vm866_vm3, %v2425_v39, 0.0  ;;  %v868_v30 = vsel %vm866_vm3, %v2433_v43, 0.0  ;;  %v870_v32 = vsel %vm866_vm3, %v2421_v37, 0.0  ;;  %v872_v34 = vsel %vm866_vm3, %v2429_v41, 0.0 }
 0x122   : > { %v869_v22 = vadd.f32 %v868_v30, %v867_v26  ;;  %v874_v36 = vsel %vm866_vm3, %v2441_v47, 0.0  ;;  %v876_v18 = vsel %vm866_vm3, %v2449_v51, 0.0  ;;  %v878_v20 = vsel %vm866_vm3, %v2437_v45, 0.0 }
 0x123   : > { %v880_v10 = vsel %vm866_vm3, %v2445_v49, 0.0  ;;  %v882_v30 = vsel %vm866_vm3, %v2457_v55, 0.0 }
 0x124   : > { %v871_v28 = vadd.f32 %v870_v32, %v869_v22  ;;  %v884_v32 = vsel %vm866_vm3, %v2465_v59, 0.0 }
 0x126   : > { %v873_v24 = vadd.f32 %v872_v34, %v871_v28  ;;  %v886_v34 = vsel %vm866_vm3, %v2453_v53, 0.0 }
 0x128   : > { %v875_v14 = vadd.f32 %v874_v36, %v873_v24  ;;  %v888_v36 = vsel %vm866_vm3, %v2461_v57, 0.0 }
 0x12a   : > { %v877_v16 = vadd.f32 %v876_v18, %v875_v14  ;;  %v890_v18 = vsel %vm866_vm3, %v2473_v63, 0.0 }
 0x12c   : > { %v879_v26 = vadd.f32 %v878_v20, %v877_v16  ;;  %v892_v20 = vsel %vm866_vm3, %v2481_v3, 0.0 }
 0x12e   : > { %v881_v22 = vadd.f32 %v880_v10, %v879_v26  ;;  %v894_v26 = vsel %vm866_vm3, %v2469_v61, 0.0 }
 0x130   : > { %v883_v28 = vadd.f32 %v882_v30, %v881_v22  ;;  %v896_v22 = vsel %vm866_vm3, %v2477_v1, 0.0 }
 0x132   : > { %v885_v24 = vadd.f32 %v884_v32, %v883_v28  ;;  %v898_v28 = vsel %vm866_vm3, %v2489_v7, 0.0 }
 0x134   : > { %v887_v14 = vadd.f32 %v886_v34, %v885_v24  ;;  %v900_v24 = vsel %vm866_vm3, %v2497_v11, 0.0 }
 0x136   : > { %v889_v16 = vadd.f32 %v888_v36, %v887_v14  ;;  %v902_v14 = vsel %vm866_vm3, %v2485_v5, 0.0 }
 0x138   : > { %v891_v10 = vadd.f32 %v890_v18, %v889_v16  ;;  %v1004_v18 = vmul.f32 %v2425_v39, %v2425_v39  ;;  %v1005_v16 = vmul.f32 %v2433_v43, %v2433_v43  ;;  %v908_v39 = vsel %vm866_vm3, %v2513_v19, 0.0 }
 0x13a   : > { %v893_v30 = vadd.f32 %v892_v20, %v891_v10  ;;  %v1006_v20 = vmul.f32 %v2421_v37, %v2421_v37  ;;  %v1069_v43 = vsel %vm866_vm3, %v1005_v16, 0.0 }
 0x13c   : > { %v895_v32 = vadd.f32 %v894_v26, %v893_v30  ;;  %v904_v26 = vsel %vm866_vm3, %v2493_v9, 0.0  ;;  %v1007_v30 = vmul.f32 %v2429_v41, %v2429_v41  ;;  %v1071_v37 = vsel %vm866_vm3, %v1006_v20, 0.0 }
 0x13e   : > { %v897_v34 = vadd.f32 %v896_v22, %v895_v32  ;;  %v906_v32 = vsel %vm866_vm3, %v2505_v15, 0.0 }
 0x140   : > { %v899_v36 = vadd.f32 %v898_v28, %v897_v34  ;;  %v1008_v28 = vmul.f32 %v2441_v47, %v2441_v47  ;;  %v1068_v34 = vsel %vm866_vm3, %v1004_v18, 0.0  ;;  %v910_v47 = vsel %vm866_vm3, %v2501_v13, 0.0 }
 0x141   : > { %v1010_v18 = vmul.f32 %v2437_v45, %v2437_v45 }
 0x142   : > { %v901_v10 = vadd.f32 %v900_v24, %v899_v36  ;;  %v1070_v36 = vadd.f32 %v1069_v43, %v1068_v34  ;;  %v1075_v16 = vsel %vm866_vm3, %v1008_v28, 0.0  ;;  %v914_v34 = vsel %vm866_vm3, %v2521_v23, 0.0 }
 0x143   : > { %v1079_v28 = vsel %vm866_vm3, %v1010_v18, 0.0 }
 0x144   : > { %v903_v22 = vadd.f32 %v902_v14, %v901_v10  ;;  %v1009_v14 = vmul.f32 %v2449_v51, %v2449_v51  ;;  %v1073_v10 = vsel %vm866_vm3, %v1007_v30, 0.0  ;;  %v1072_v6 = vadd.f32 %v1071_v37, %v1070_v36 }
 0x145   : > { %v1013_v36 = vmul.f32 %v2465_v59, %v2465_v59 }
 0x146   : > { %v905_v24 = vadd.f32 %v904_v26, %v903_v22  ;;  %v1074_v43 = vadd.f32 %v1073_v10, %v1072_v6  ;;  %v912_v26 = vsel %vm866_vm3, %v2509_v17, 0.0  ;;  %v1011_v22 = vmul.f32 %v2445_v49, %v2445_v49 }
 0x147   : > { %v1077_v30 = vsel %vm866_vm3, %v1009_v14, 0.0  ;;  %v916_v6 = vsel %vm866_vm3, %v2529_v27, 0.0 }
 0x148   : > { %v907_v41 = vadd.f32 %v906_v32, %v905_v24  ;;  %v1076_v37 = vadd.f32 %v1075_v16, %v1074_v43  ;;  %v1012_v24 = vmul.f32 %v2457_v55, %v2457_v55  ;;  %v1081_v14 = vsel %vm866_vm3, %v1011_v22, 0.0 }
 0x149   : > { %v918_v16 = vsel %vm866_vm3, %v2517_v21, 0.0  ;;  %v1085_v22 = vsel %vm866_vm3, %v1013_v36, 0.0 }
 0x14a   : > { %v909_v20 = vadd.f32 %v908_v39, %v907_v41  ;;  %v1078_v41 = vadd.f32 %v1077_v30, %v1076_v37  ;;  %v1083_v18 = vsel %vm866_vm3, %v1012_v24, 0.0  ;;  %v920_v30 = vsel %vm866_vm3, %v2525_v25, 0.0 }
 0x14c   : > { %v911_v32 = vadd.f32 %v910_v47, %v909_v20  ;;  %v1080_v10 = vadd.f32 %v1079_v28, %v1078_v41  ;;  %v1014_v20 = vmul.f32 %v2453_v53, %v2453_v53  ;;  %v922_v28 = vsel %vm866_vm3, %v2537_v31, 0.0 }
 0x14e   : > { %v913_v39 = vadd.f32 %v912_v26, %v911_v32  ;;  %v1082_v26 = vadd.f32 %v1081_v14, %v1080_v10  ;;  %v1015_v32 = vmul.f32 %v2461_v57, %v2461_v57  ;;  %v1087_v24 = vsel %vm866_vm3, %v1014_v20, 0.0 }
 0x14f   : > { %v924_v14 = vsel %vm866_vm3, %v2545_v35, 0.0 }
 0x150   : > { %v915_v47 = vadd.f32 %v914_v34, %v913_v39  ;;  %v1084_v34 = vadd.f32 %v1083_v18, %v1082_v26  ;;  %v1016_v39 = vmul.f32 %v2473_v63, %v2473_v63  ;;  %v1089_v36 = vsel %vm866_vm3, %v1015_v32, 0.0 }
 0x151   : > { %v926_v18 = vsel %vm866_vm3, %v2533_v29, 0.0 }
 0x152   : > { %v917_v43 = vadd.f32 %v916_v6, %v915_v47  ;;  %v1086_v6 = vadd.f32 %v1085_v22, %v1084_v34  ;;  %v1017_v47 = vmul.f32 %v2481_v3, %v2481_v3  ;;  %v1091_v20 = vsel %vm866_vm3, %v1016_v39, 0.0 }
 0x153   : > { %v928_v22 = vsel %vm866_vm3, %v2541_v33, 0.0 }
 0x154   : > { %v919_v37 = vadd.f32 %v918_v16, %v917_v43  ;;  %v1088_v16 = vadd.f32 %v1087_v24, %v1086_v6  ;;  %v1018_v43 = vmul.f32 %v2469_v61, %v2469_v61  ;;  %v1093_v32 = vsel %vm866_vm3, %v1017_v47, 0.0 }
 0x155   : > { %v930_v24 = vsel %vm866_vm3, %v2427_v40, 0.0 }
 0x156   : > { %v921_v41 = vadd.f32 %v920_v30, %v919_v37  ;;  %v1090_v30 = vadd.f32 %v1089_v36, %v1088_v16  ;;  %v1019_v37 = vmul.f32 %v2477_v1, %v2477_v1  ;;  %v1095_v39 = vsel %vm866_vm3, %v1018_v43, 0.0 }
 0x157   : > { %v932_v36 = vsel %vm866_vm3, %v2435_v44, 0.0 }
 0x158   : > { %v923_v10 = vadd.f32 %v922_v28, %v921_v41  ;;  %v1092_v28 = vadd.f32 %v1091_v20, %v1090_v30  ;;  %v1020_v41 = vmul.f32 %v2489_v7, %v2489_v7  ;;  %v1097_v47 = vsel %vm866_vm3, %v1019_v37, 0.0 }
 0x159   : > { %v934_v20 = vsel %vm866_vm3, %v2423_v38, 0.0 }
 0x15a   : > { %v925_v26 = vadd.f32 %v924_v14, %v923_v10  ;;  %v1094_v14 = vadd.f32 %v1093_v32, %v1092_v28  ;;  %v1021_v10 = vmul.f32 %v2497_v11, %v2497_v11  ;;  %v1099_v43 = vsel %vm866_vm3, %v1020_v41, 0.0 }
 0x15b   : > { %v936_v32 = vsel %vm866_vm3, %v2431_v42, 0.0 }
 0x15c   : > { %v927_v34 = vadd.f32 %v926_v18, %v925_v26  ;;  %v1096_v18 = vadd.f32 %v1095_v39, %v1094_v14  ;;  %v1022_v26 = vmul.f32 %v2485_v5, %v2485_v5  ;;  %v1101_v37 = vsel %vm866_vm3, %v1021_v10, 0.0 }
 0x15d   : > { %v938_v39 = vsel %vm866_vm3, %v2443_v48, 0.0 }
 0x15e   : > { %v929_v6 = vadd.f32 %v928_v22, %v927_v34  ;;  %v1098_v22 = vadd.f32 %v1097_v47, %v1096_v18  ;;  %v1023_v34 = vmul.f32 %v2493_v9, %v2493_v9  ;;  %v1103_v41 = vsel %vm866_vm3, %v1022_v26, 0.0 }
 0x15f   : > { %v940_v47 = vsel %vm866_vm3, %v2451_v52, 0.0 }
 0x160   : > { %v931_v16 = vadd.f32 %v930_v24, %v929_v6  ;;  %v1100_v24 = vadd.f32 %v1099_v43, %v1098_v22  ;;  %v1024_v6 = vmul.f32 %v2505_v15, %v2505_v15  ;;  %v1105_v10 = vsel %vm866_vm3, %v1023_v34, 0.0 }
 0x161   : > { %v942_v43 = vsel %vm866_vm3, %v2439_v46, 0.0 }
 0x162   : > { %v933_v30 = vadd.f32 %v932_v36, %v931_v16  ;;  %v1102_v36 = vadd.f32 %v1101_v37, %v1100_v24  ;;  %v1025_v16 = vmul.f32 %v2513_v19, %v2513_v19  ;;  %v1107_v26 = vsel %vm866_vm3, %v1024_v6, 0.0 }
 0x163   : > { %v944_v37 = vsel %vm866_vm3, %v2447_v50, 0.0 }
 0x164   : > { %v935_v28 = vadd.f32 %v934_v20, %v933_v30  ;;  %v1104_v20 = vadd.f32 %v1103_v41, %v1102_v36  ;;  %v1026_v30 = vmul.f32 %v2501_v13, %v2501_v13  ;;  %v1109_v34 = vsel %vm866_vm3, %v1025_v16, 0.0 }
 0x165   : > { %v946_v41 = vsel %vm866_vm3, %v2459_v56, 0.0 }
 0x166   : > { %v937_v14 = vadd.f32 %v936_v32, %v935_v28  ;;  %v1106_v32 = vadd.f32 %v1105_v10, %v1104_v20  ;;  %v1027_v28 = vmul.f32 %v2509_v17, %v2509_v17  ;;  %v1111_v6 = vsel %vm866_vm3, %v1026_v30, 0.0 }
 0x167   : > { %v948_v10 = vsel %vm866_vm3, %v2467_v60, 0.0 }
 0x168   : > { %v939_v18 = vadd.f32 %v938_v39, %v937_v14  ;;  %v1108_v39 = vadd.f32 %v1107_v26, %v1106_v32  ;;  %v1028_v14 = vmul.f32 %v2521_v23, %v2521_v23  ;;  %v1113_v16 = vsel %vm866_vm3, %v1027_v28, 0.0 }
 0x169   : > { %v950_v26 = vsel %vm866_vm3, %v2455_v54, 0.0 }
 0x16a   : > { %v941_v22 = vadd.f32 %v940_v47, %v939_v18  ;;  %v1110_v47 = vadd.f32 %v1109_v34, %v1108_v39  ;;  %v1029_v18 = vmul.f32 %v2529_v27, %v2529_v27  ;;  %v1115_v30 = vsel %vm866_vm3, %v1028_v14, 0.0 }
 0x16b   : > { %v952_v34 = vsel %vm866_vm3, %v2463_v58, 0.0 }
 0x16c   : > { %v943_v24 = vadd.f32 %v942_v43, %v941_v22  ;;  %v1112_v43 = vadd.f32 %v1111_v6, %v1110_v47  ;;  %v1030_v22 = vmul.f32 %v2517_v21, %v2517_v21  ;;  %v1117_v28 = vsel %vm866_vm3, %v1029_v18, 0.0 }
 0x16d   : > { %v954_v6 = vsel %vm866_vm3, %v2475_v0, 0.0 }
 0x16e   : > { %v945_v36 = vadd.f32 %v944_v37, %v943_v24  ;;  %v1114_v37 = vadd.f32 %v1113_v16, %v1112_v43  ;;  %v1031_v24 = vmul.f32 %v2525_v25, %v2525_v25  ;;  %v1119_v14 = vsel %vm866_vm3, %v1030_v22, 0.0 }
 0x16f   : > { %v956_v16 = vsel %vm866_vm3, %v2483_v4, 0.0 }
 0x170   : > { %v947_v20 = vadd.f32 %v946_v41, %v945_v36  ;;  %v1116_v41 = vadd.f32 %v1115_v30, %v1114_v37  ;;  %v1032_v36 = vmul.f32 %v2537_v31, %v2537_v31  ;;  %v1121_v18 = vsel %vm866_vm3, %v1031_v24, 0.0 }
 0x171   : > { %v958_v30 = vsel %vm866_vm3, %v2471_v62, 0.0 }
 0x172   : > { %v949_v32 = vadd.f32 %v948_v10, %v947_v20  ;;  %v1118_v10 = vadd.f32 %v1117_v28, %v1116_v41  ;;  %v1033_v20 = vmul.f32 %v2545_v35, %v2545_v35  ;;  %v1123_v22 = vsel %vm866_vm3, %v1032_v36, 0.0 }
 0x173   : > { %v960_v28 = vsel %vm866_vm3, %v2479_v2, 0.0 }
 0x174   : > { %v951_v39 = vadd.f32 %v950_v26, %v949_v32  ;;  %v1120_v26 = vadd.f32 %v1119_v14, %v1118_v10  ;;  %v1034_v32 = vmul.f32 %v2533_v29, %v2533_v29  ;;  %v1125_v24 = vsel %vm866_vm3, %v1033_v20, 0.0 }
 0x175   : > { %v962_v14 = vsel %vm866_vm3, %v2491_v8, 0.0 }
 0x176   : > { %v953_v47 = vadd.f32 %v952_v34, %v951_v39  ;;  %v1122_v34 = vadd.f32 %v1121_v18, %v1120_v26  ;;  %v1035_v39 = vmul.f32 %v2541_v33, %v2541_v33  ;;  %v1127_v36 = vsel %vm866_vm3, %v1034_v32, 0.0 }
 0x177   : > { %v964_v18 = vsel %vm866_vm3, %v2499_v12, 0.0 }
 0x178   : > { %v955_v43 = vadd.f32 %v954_v6, %v953_v47  ;;  %v1124_v6 = vadd.f32 %v1123_v22, %v1122_v34  ;;  %v1036_v47 = vmul.f32 %v2427_v40, %v2427_v40  ;;  %v1129_v20 = vsel %vm866_vm3, %v1035_v39, 0.0  ;;  %v3414_v22 = vld [vmem:[#allocation26_spill] sm:$0xff] }
 0x179   : > { %v1038_v34 = vmul.f32 %v2423_v38, %v2423_v38  ;;  %v1040_v38 = vmul.f32 %v2443_v48, %v2443_v48  ;;  %v1042_v48 = vmul.f32 %v2439_v46, %v2439_v46  ;;  %v1044_v46 = vmul.f32 %v2459_v56, %v2459_v56 }
 0x17a   : > { %v957_v37 = vadd.f32 %v956_v16, %v955_v43  ;;  %v1126_v16 = vadd.f32 %v1125_v24, %v1124_v6  ;;  %v1037_v43 = vmul.f32 %v2435_v44, %v2435_v44  ;;  %v1131_v32 = vsel %vm866_vm3, %v1036_v47, 0.0 }
 0x17b   : > { %v1039_v44 = vmul.f32 %v2431_v42, %v2431_v42  ;;  %v1135_v47 = vsel %vm866_vm3, %v1038_v34, 0.0  ;;  %v1041_v42 = vmul.f32 %v2451_v52, %v2451_v52  ;;  %v1139_v34 = vsel %vm866_vm3, %v1040_v38, 0.0 }
 0x17c   : > { %v959_v41 = vadd.f32 %v958_v30, %v957_v37  ;;  %v1128_v30 = vadd.f32 %v1127_v36, %v1126_v16  ;;  %v966_v37 = vsel %vm866_vm3, %v3414_v22, 0.0  ;;  %v1133_v39 = vsel %vm866_vm3, %v1037_v43, 0.0 }
 0x17d   : > { %v1137_v43 = vsel %vm866_vm3, %v1039_v44, 0.0  ;;  %v1043_v52 = vmul.f32 %v2447_v50, %v2447_v50  ;;  %v1141_v44 = vsel %vm866_vm3, %v1041_v42, 0.0  ;;  %v1143_v38 = vsel %vm866_vm3, %v1042_v48, 0.0 }
 0x17e   : > { %v961_v10 = vadd.f32 %v960_v28, %v959_v41  ;;  %v1130_v24 = vadd.f32 %v1129_v20, %v1128_v30  ;;  %v3415_v41 = vld [vmem:[#allocation27_spill] sm:$0xff]  ;;  %v1045_v50 = vmul.f32 %v2467_v60, %v2467_v60  ;;  %v1046_v56 = vmul.f32 %v2455_v54, %v2455_v54 }
 0x17f   : > { %v968_v6 = vsel %vm866_vm3, %v3415_v41, 0.0  ;;  %v1145_v42 = vsel %vm866_vm3, %v1043_v52, 0.0  ;;  %v1147_v48 = vsel %vm866_vm3, %v1044_v46, 0.0  ;;  %v1047_v60 = vmul.f32 %v2463_v58, %v2463_v58 }
 0x180   : > { %v963_v26 = vadd.f32 %v962_v14, %v961_v10  ;;  %v1132_v36 = vadd.f32 %v1131_v32, %v1130_v24  ;;  %v3416_v10 = vld [vmem:[#allocation29_spill] sm:$0xff]  ;;  %v1149_v52 = vsel %vm866_vm3, %v1045_v50, 0.0  ;;  %v1048_v54 = vmul.f32 %v2475_v0, %v2475_v0 }
 0x181   : > { %v970_v16 = vsel %vm866_vm3, %v3416_v10, 0.0  ;;  %v1151_v46 = vsel %vm866_vm3, %v1046_v56, 0.0  ;;  %v1049_v58 = vmul.f32 %v2483_v4, %v2483_v4  ;;  %v1153_v50 = vsel %vm866_vm3, %v1047_v60, 0.0 }
 0x182   : > { %v965_v28 = vadd.f32 %v964_v18, %v963_v26  ;;  %v1134_v20 = vadd.f32 %v1133_v39, %v1132_v36  ;;  %v3417_v26 = vld [vmem:[#allocation31_spill] sm:$0xff]  ;;  %v1050_v0 = vmul.f32 %v2471_v62, %v2471_v62  ;;  %v1155_v56 = vsel %vm866_vm3, %v1048_v54, 0.0 }
 0x183   : > { %v972_v30 = vsel %vm866_vm3, %v3417_v26, 0.0  ;;  %v1051_v4 = vmul.f32 %v2479_v2, %v2479_v2  ;;  %v1157_v60 = vsel %vm866_vm3, %v1049_v58, 0.0  ;;  %v1053_v54 = vmul.f32 %v2499_v12, %v2499_v12 }
 0x184   : > { %v967_v14 = vadd.f32 %v966_v37, %v965_v28  ;;  %v1136_v32 = vadd.f32 %v1135_v47, %v1134_v20  ;;  %v3418_v28 = vld [vmem:[#allocation28_spill] sm:$0xff] }
 0x185   : > { %v974_v24 = vsel %vm866_vm3, %v3418_v28, 0.0 }
 0x186   : > { %v969_v18 = vadd.f32 %v968_v6, %v967_v14  ;;  %v1138_v39 = vadd.f32 %v1137_v43, %v1136_v32  ;;  %v3419_v14 = vld [vmem:[#allocation30_spill] sm:$0xff] }
 0x187   : > { %v976_v36 = vsel %vm866_vm3, %v3419_v14, 0.0 }
 0x188   : > { %v971_v37 = vadd.f32 %v970_v16, %v969_v18  ;;  %v1140_v47 = vadd.f32 %v1139_v34, %v1138_v39  ;;  %v3420_v18 = vld [vmem:[#allocation33_spill] sm:$0xff] }
 0x189   : > { %v978_v20 = vsel %vm866_vm3, %v3420_v18, 0.0 }
 0x18a   : > { %v973_v6 = vadd.f32 %v972_v30, %v971_v37  ;;  %v1142_v43 = vadd.f32 %v1141_v44, %v1140_v47  ;;  %v3421_v37 = vld [vmem:[#allocation35_spill] sm:$0xff] }
 0x18b   : > { %v980_v32 = vsel %vm866_vm3, %v3421_v37, 0.0 }
 0x18c   : > { %v975_v16 = vadd.f32 %v974_v24, %v973_v6  ;;  %v1144_v34 = vadd.f32 %v1143_v38, %v1142_v43  ;;  %v3422_v6 = vld [vmem:[#allocation32_spill] sm:$0xff] }
 0x18d   : > { %v982_v39 = vsel %vm866_vm3, %v3422_v6, 0.0 }
 0x18e   : > { %v977_v30 = vadd.f32 %v976_v36, %v975_v16  ;;  %v1146_v44 = vadd.f32 %v1145_v42, %v1144_v34  ;;  %v3423_v16 = vld [vmem:[#allocation34_spill] sm:$0xff] }
 0x18f   : > { %v984_v47 = vsel %vm866_vm3, %v3423_v16, 0.0 }
 0x190   : > { %v979_v24 = vadd.f32 %v978_v20, %v977_v30  ;;  %v1148_v38 = vadd.f32 %v1147_v48, %v1146_v44  ;;  %v3424_v30 = vld [vmem:[#allocation37_spill] sm:$0xff] }
 0x191   : > { %v986_v43 = vsel %vm866_vm3, %v3424_v30, 0.0 }
 0x192   : > { %v981_v36 = vadd.f32 %v980_v32, %v979_v24  ;;  %v1150_v42 = vadd.f32 %v1149_v52, %v1148_v38  ;;  %v3425_v24 = vld [vmem:[#allocation39_spill] sm:$0xff] }
 0x193   : > { %v988_v34 = vsel %vm866_vm3, %v3425_v24, 0.0 }
 0x194   : > { %v983_v20 = vadd.f32 %v982_v39, %v981_v36  ;;  %v1152_v48 = vadd.f32 %v1151_v46, %v1150_v42  ;;  %v3426_v36 = vld [vmem:[#allocation36_spill] sm:$0xff]  ;;  %v1159_v42 = vsel %vm866_vm3, %v1050_v0, 0.0  ;;  %v1165_v0 = vsel %vm866_vm3, %v1053_v54, 0.0 }
 0x195   : > { %v990_v44 = vsel %vm866_vm3, %v3426_v36, 0.0 }
 0x196   : > { %v985_v32 = vadd.f32 %v984_v47, %v983_v20  ;;  %v1154_v52 = vadd.f32 %v1153_v50, %v1152_v48  ;;  %v3427_v20 = vld [vmem:[#allocation38_spill] sm:$0xff]  ;;  %v1054_v48 = vmul.f32 %v3414_v22, %v3414_v22  ;;  %v1057_v22 = vmul.f32 %v3417_v26, %v3417_v26 }
 0x197   : > { %v992_v38 = vsel %vm866_vm3, %v3427_v20, 0.0 }
 0x198   : > { %v987_v39 = vadd.f32 %v986_v43, %v985_v32  ;;  %v1156_v46 = vadd.f32 %v1155_v56, %v1154_v52  ;;  %v1052_v32 = vmul.f32 %v2491_v8, %v2491_v8 }
 0x19a   : > { %v989_v47 = vadd.f32 %v988_v34, %v987_v39  ;;  %v1158_v40 = vadd.f32 %v1157_v60, %v1156_v46  ;;  %v1161_v34 = vsel %vm866_vm3, %v1051_v4, 0.0  ;;  %v1163_v58 = vsel %vm866_vm3, %v1052_v32, 0.0 }
 0x19b   : > { %v1056_v60 = vmul.f32 %v3416_v10, %v3416_v10  ;;  %v1167_v4 = vsel %vm866_vm3, %v1054_v48, 0.0  ;;  %v1059_v10 = vmul.f32 %v3419_v14, %v3419_v14  ;;  %v1062_v14 = vmul.f32 %v3422_v6, %v3422_v6 }
 0x19c   : > { %v991_v43 = vadd.f32 %v990_v44, %v989_v47  ;;  %v1160_v39 = vadd.f32 %v1159_v42, %v1158_v40  ;;  %v1055_v47 = vmul.f32 %v3415_v41, %v3415_v41  ;;  %v865_v42 = vld [vmem:[#allocation2] sm:$0x1]  ;;  %v1058_v41 = vmul.f32 %v3418_v28, %v3418_v28 }
 0x19d   : > { %v1171_v54 = vsel %vm866_vm3, %v1056_v60, 0.0 }
 0x19e   : > { %v993_v62 = vadd.f32 %v992_v38, %v991_v43  ;;  %v1162_v56 = vadd.f32 %v1161_v34, %v1160_v39  ;;  %v1173_v39 = vsel %vm866_vm3, %v1057_v22, 0.0  ;;  %v1065_v22 = vmul.f32 %v3425_v24, %v3425_v24 }
 0x1a0   : > { %v994_v50 = vrot.slane %v993_v62, 4  ;;  %v1164_v38 = vadd.f32 %v1163_v58, %v1162_v56  ;;  %v1060_v58 = vmul.f32 %v3420_v18, %v3420_v18  ;;  %v1061_v56 = vmul.f32 %v3421_v37, %v3421_v37 }
 0x1a1   : > { %v1063_v18 = vmul.f32 %v3423_v16, %v3423_v16  ;;  %v1183_v37 = vsel %vm866_vm3, %v1062_v14, 0.0 }
 0x1a2   : > { %v995_v44 = vadd.f32 %v994_v50, %v993_v62  ;;  %v1166_v43 = vadd.f32 %v1165_v0, %v1164_v38  ;;  %v1169_v62 = vsel %vm866_vm3, %v1055_v47, 0.0  ;;  %v1177_v47 = vsel %vm866_vm3, %v1059_v10, 0.0 }
 0x1a3   : > { %v1181_v60 = vsel %vm866_vm3, %v1061_v56, 0.0  ;;  %v1185_v6 = vsel %vm866_vm3, %v1063_v18, 0.0 }
 0x1a4   : > { %v996_v52 = vrot.slane %v995_v44, 2  ;;  %v1168_v32 = vadd.f32 %v1167_v4, %v1166_v43 }
 0x1a6   : > { %v997_v40 = vadd.f32 %v996_v52, %v995_v44  ;;  %v1170_v50 = vadd.f32 %v1169_v62, %v1168_v32  ;;  %v1175_v44 = vsel %vm866_vm3, %v1058_v41, 0.0  ;;  %v1179_v52 = vsel %vm866_vm3, %v1060_v58, 0.0 }
 0x1a8   : > { %v998_v46 = vrot.slane %v997_v40, 1  ;;  %v1172_v26 = vadd.f32 %v1171_v54, %v1170_v50 }
 0x1aa   : > { %v999_v34 = vadd.f32 %v998_v46, %v997_v40  ;;  %v1174_v28 = vadd.f32 %v1173_v39, %v1172_v26  ;;  %v1064_v40 = vmul.f32 %v3424_v30, %v3424_v30  ;;  %v1066_v46 = vmul.f32 %v3426_v36, %v3426_v36 }
 0x1ab   : > { %v1189_v30 = vsel %vm866_vm3, %v1065_v22, 0.0 }
 0x1ac   : > { %v1000_v48 = vadd.f32 %v999_v34, %v865_v42  ;;  %v1176_v0 = vadd.f32 %v1175_v44, %v1174_v28  ;;  %v1187_v16 = vsel %vm866_vm3, %v1064_v40, 0.0  ;;  %v1067_v42 = vmul.f32 %v3427_v20, %v3427_v20  ;;  %v1003_v44 = vld [vmem:[#allocation3] sm:$0x1] }
 0x1ad   : > { %v1191_v54 = vsel %vm866_vm3, %v1066_v46, 0.0 }
 0x1ae   : > { %1002 = vst.msk [vmem:[#allocation2] sm:$0x1] %vm1001_vm4, %v1000_v48  ;;  %v1178_v38 = vadd.f32 %v1177_v47, %v1176_v0  ;;  %v1193_v24 = vsel %vm866_vm3, %v1067_v42, 0.0 }
 0x1b0   : > { %v1180_v4 = vadd.f32 %v1179_v52, %v1178_v38 }
 0x1b2   : > { %v1182_v43 = vadd.f32 %v1181_v60, %v1180_v4 }
 0x1b4   : > { %v1184_v62 = vadd.f32 %v1183_v37, %v1182_v43 }
 0x1b6   : > { %v1186_v32 = vadd.f32 %v1185_v6, %v1184_v62 }
 0x1b8   : > { %v1188_v41 = vadd.f32 %v1187_v16, %v1186_v32 }
 0x1ba   : > { %v1190_v34 = vadd.f32 %v1189_v30, %v1188_v41 }
 0x1bc   : > { %v1192_v50 = vadd.f32 %v1191_v54, %v1190_v34 }
 0x1be   : > { %v1194_v10 = vadd.f32 %v1193_v24, %v1192_v50 }
 0x1c0   : > { %v1195_v39 = vrot.slane %v1194_v10, 4 }
 0x1c2   : > { %v1196_v48 = vadd.f32 %v1195_v39, %v1194_v10 }
 0x1c4   : > { %v1197_v26 = vrot.slane %v1196_v48, 2 }
 0x1c6   : > { %v1198_v36 = vadd.f32 %v1197_v26, %v1196_v48 }
 0x1c8   : > { %v1199_v58 = vrot.slane %v1198_v36, 1 }
 0x1ca   : > { %v1200_v28 = vadd.f32 %v1199_v58, %v1198_v36 }
 0x1cc   : > { %v1201_v56 = vadd.f32 %v1200_v28, %v1003_v44 }
 0x1ce   : > { %1202 = vst.msk [vmem:[#allocation3] sm:$0x1] %vm1001_vm4, %v1201_v56 }
 0x1cf PF: > { %p1203_p6 = scmp.eq.s32.totalorder %s2227_s15, 1 }
 0x1d0   : > { %v1208_v20 = vld [vmem:[#allocation2] sm:$0x1] (%p1203_p6)  ;;  %vm1219_vm5 = vcmask (%p1203_p6), 57344  }
 0x1d1   : > { %1207 = sbr.rel (!%p1203_p6) target bundleno = 499 (0x1f3), region = 48  ;;  %v1209_v0 = vmul.f32 (%p1203_p6), 0.001953125, %v1208_v20  ;;  %v1215_v4 = vld [vmem:[%s3343_s2] sm:$0x1] (%p1203_p6) }
 0x1d2   : > { %v1221_v43 = vld [vmem:[%s3344_s3] sm:$0x1] (%p1203_p6) }
 0x1d3   : > { %v1212_v52 = vmul.f32 (%p1203_p6), %v1209_v0, %v1209_v0 }
 0x1d5   : > { %v1210_v47 = vld [vmem:[#allocation3] sm:$0x1] (%p1203_p6) }
 0x1d6   : > { %v1211_v14 = vmul.f32 0.001953125, %v1210_v47 }
 0x1d8   : > { %v1213_v38 = vsub.f32 %v1211_v14, %v1212_v52 }
 0x1da   : > { %v1214_v18 = vmax.f32 %v1213_v38, 0.0 }
 0x1dc   : > { %v1216_v60 = vadd.f32 1e-05, %v1214_v18 }
 0x1de   : > { %2211 = vrsqrt.f32 %v1216_v60 }
 0x1eb   : > { %v2212_v40 = vpop.eup %2211 }
 0x1ec   : > { %v1218_v37 = vmul.f32 %v2212_v40, %v1215_v4 }
 0x1ee   : > { %1220 = vst.msk [vmem:[#allocation4] sm:$0x1] %vm1219_vm5, %v1218_v37  ;;  %v1222_v22 = vmul.f32 %v1218_v37, %v1209_v0 }
 0x1f0   : > { %v1223_v6 = vsub.f32 %v1221_v43, %v1222_v22 }
 0x1f2   : > { %1224 = vst.msk [vmem:[#allocation5] sm:$0x1] %vm1219_vm5, %v1223_v6 }
 0x1f3 PF: > { %p1901_p7 = scmp.ne.s32.totalorder %s2227_s15, 1 }
 0x1f5   : > { %1227 = sbr.rel (%p1901_p7) target bundleno = 581 (0x245), region = 52 }
 0x1fa   : > { %v2880_v62 = vld [vmem:[#allocation4] ss:$0 sm:$0xff]  ;;  %v2882_v46 = vld [vmem:[#allocation5] ss:$0 sm:$0xff]  ;;  %vm1690_vm6 = vcmask 60416   ;;  %v3428_v16 = vld [vmem:[#allocation8_spill] sm:$0xff] }
 0x1fb   : > { %v1235_v32 = vmul.f32 %v2880_v62, %v3428_v16  ;;  %v3429_v42 = vld [vmem:[#allocation12_spill] sm:$0xff]  ;;  %v3430_v41 = vld [vmem:[#allocation6_spill] sm:$0xff]  ;;  %v3432_v50 = vld [vmem:[#allocation15_spill] sm:$0xff]  ;;  %v1240_v39 = vmul.f32 %v2880_v62, %v2449_v51  ;;  %v1241_v48 = vmul.f32 %v2437_v45, %v2880_v62  ;;  %v1242_v26 = vmul.f32 %v2445_v49, %v2880_v62 }
 0x1fc   : > { %v1236_v30 = vmul.f32 %v2880_v62, %v3429_v42  ;;  %v1237_v54 = vmul.f32 %v3430_v41, %v2880_v62  ;;  %v3431_v34 = vld [vmem:[#allocation10_spill] sm:$0xff]  ;;  %v1239_v10 = vmul.f32 %v2880_v62, %v3432_v50  ;;  %v1243_v42 = vmul.f32 %v2880_v62, %v2457_v55 }
 0x1fd   : > { %v1238_v24 = vmul.f32 %v3431_v34, %v2880_v62  ;;  %v1306_v36 = vadd.f32 %v2882_v46, %v1235_v32  ;;  %v1311_v20 = vadd.f32 %v2882_v46, %v1240_v39  ;;  %v1312_v51 = vadd.f32 %v2882_v46, %v1241_v48 }
 0x1fe   : > { %v1307_v58 = vadd.f32 %v2882_v46, %v1236_v30  ;;  %v1308_v44 = vadd.f32 %v2882_v46, %v1237_v54  ;;  %v1310_v56 = vadd.f32 %v2882_v46, %v1239_v10  ;;  %v1313_v47 = vadd.f32 %v2882_v46, %v1242_v26 }
 0x1ff   : > { %v1309_v28 = vadd.f32 %v2882_v46, %v1238_v24  ;;  %v1370_v45 = vmax.f32 %v1306_v36, 0.0  ;;  %v1375_v38 = vmax.f32 %v1311_v20, 0.0  ;;  %v1376_v18 = vmax.f32 %v1312_v51, 0.0 }
 0x200   : > { %v1371_v0 = vmax.f32 %v1307_v58, 0.0  ;;  %v1372_v14 = vmax.f32 %v1308_v44, 0.0  ;;  %v1374_v52 = vmax.f32 %v1310_v56, 0.0  ;;  %v1377_v60 = vmax.f32 %v1313_v47, 0.0 }
 0x201   : > { %v1373_v49 = vmax.f32 %v1309_v28, 0.0  ;;  %v1974_v4 = vpack.c.bf16 %v1370_v45, %v1370_v45  ;;  %v1979_v6 = vpack.c.bf16 %v1375_v38, %v1375_v38  ;;  %v1980_v16 = vpack.c.bf16 %v1376_v18, %v1376_v18 }
 0x202   : > { %v1975_v40 = vpack.c.bf16 %v1371_v0, %v1371_v0  ;;  %v1976_v37 = vpack.c.bf16 %v1372_v14, %v1372_v14  ;;  %v1978_v22 = vpack.c.bf16 %v1374_v52, %v1374_v52  ;;  %v1981_v32 = vpack.c.bf16 %v1377_v60, %v1377_v60 }
 0x203   : > { %v1977_v43 = vpack.c.bf16 %v1373_v49, %v1373_v49  ;;  %1691 = vst.msk [vmem:[%s3345_s4] sm:$0xf] %vm1690_vm6, %v1974_v4  ;;  %v1244_v30 = vmul.f32 %v2880_v62, %v2465_v59  ;;  %v1245_v41 = vmul.f32 %v2453_v53, %v2880_v62  ;;  %v1246_v54 = vmul.f32 %v2461_v57, %v2880_v62 }
 0x204   : > { %1692 = vst.msk [vmem:[%s3345_s4 + $0x4] sm:$0xf] %vm1690_vm6, %v1975_v40  ;;  %1693 = vst.msk [vmem:[%s3345_s4 + $0x8] sm:$0xf] %vm1690_vm6, %v1976_v37  ;;  %v1247_v53 = vmul.f32 %v2880_v62, %v2473_v63  ;;  %v1248_v55 = vmul.f32 %v2880_v62, %v2481_v3  ;;  %v1249_v57 = vmul.f32 %v2469_v61, %v2880_v62 }
 0x205   : > { %1694 = vst.msk [vmem:[%s3345_s4 + $0xc] sm:$0xf] %vm1690_vm6, %v1977_v43  ;;  %1695 = vst.msk [vmem:[%s3345_s4 + $0x10] sm:$0xf] %vm1690_vm6, %v1978_v22  ;;  %v1250_v59 = vmul.f32 %v2477_v1, %v2880_v62  ;;  %v1314_v34 = vadd.f32 %v2882_v46, %v1243_v42  ;;  %v1315_v24 = vadd.f32 %v2882_v46, %v1244_v30 }
 0x206   : > { %1696 = vst.msk [vmem:[%s3345_s4 + $0x14] sm:$0xf] %vm1690_vm6, %v1979_v6  ;;  %1697 = vst.msk [vmem:[%s3345_s4 + $0x18] sm:$0xf] %vm1690_vm6, %v1980_v16  ;;  %v1316_v50 = vadd.f32 %v2882_v46, %v1245_v41  ;;  %v1317_v10 = vadd.f32 %v2882_v46, %v1246_v54  ;;  %v1318_v39 = vadd.f32 %v2882_v46, %v1247_v53 }
 0x207   : > { %1698 = vst.msk [vmem:[%s3345_s4 + $0x1c] sm:$0xf] %vm1690_vm6, %v1981_v32  ;;  %v1319_v63 = vadd.f32 %v2882_v46, %v1248_v55  ;;  %v1320_v3 = vadd.f32 %v2882_v46, %v1249_v57  ;;  %v1321_v48 = vadd.f32 %v2882_v46, %v1250_v59  ;;  %v1378_v61 = vmax.f32 %v1314_v34, 0.0 }
 0x208   : > { %v1379_v26 = vmax.f32 %v1315_v24, 0.0  ;;  %v1380_v36 = vmax.f32 %v1316_v50, 0.0  ;;  %v1381_v1 = vmax.f32 %v1317_v10, 0.0  ;;  %v1382_v58 = vmax.f32 %v1318_v39, 0.0 }
 0x209   : > { %v1383_v44 = vmax.f32 %v1319_v63, 0.0  ;;  %v1384_v28 = vmax.f32 %v1320_v3, 0.0  ;;  %v1385_v56 = vmax.f32 %v1321_v48, 0.0  ;;  %v1982_v20 = vpack.c.bf16 %v1378_v61, %v1378_v61 }
 0x20a   : > { %v1983_v51 = vpack.c.bf16 %v1379_v26, %v1379_v26  ;;  %v1984_v47 = vpack.c.bf16 %v1380_v36, %v1380_v36  ;;  %v1985_v45 = vpack.c.bf16 %v1381_v1, %v1381_v1  ;;  %v1986_v0 = vpack.c.bf16 %v1382_v58, %v1382_v58 }
 0x20b   : > { %v1987_v14 = vpack.c.bf16 %v1383_v44, %v1383_v44  ;;  %v1988_v49 = vpack.c.bf16 %v1384_v28, %v1384_v28  ;;  %v1989_v52 = vpack.c.bf16 %v1385_v56, %v1385_v56  ;;  %1699 = vst.msk [vmem:[%s3345_s4 + $0x20] sm:$0xf] %vm1690_vm6, %v1982_v20  ;;  %v1251_v38 = vmul.f32 %v2880_v62, %v2489_v7 }
 0x20c   : > { %1700 = vst.msk [vmem:[%s3345_s4 + $0x24] sm:$0xf] %vm1690_vm6, %v1983_v51  ;;  %1701 = vst.msk [vmem:[%s3345_s4 + $0x28] sm:$0xf] %vm1690_vm6, %v1984_v47  ;;  %v1252_v18 = vmul.f32 %v2880_v62, %v2497_v11  ;;  %v1253_v60 = vmul.f32 %v2485_v5, %v2880_v62  ;;  %v1254_v4 = vmul.f32 %v2493_v9, %v2880_v62 }
 0x20d   : > { %1702 = vst.msk [vmem:[%s3345_s4 + $0x2c] sm:$0xf] %vm1690_vm6, %v1985_v45  ;;  %1703 = vst.msk [vmem:[%s3345_s4 + $0x30] sm:$0xf] %vm1690_vm6, %v1986_v0  ;;  %v1255_v5 = vmul.f32 %v2880_v62, %v2505_v15  ;;  %v1256_v7 = vmul.f32 %v2880_v62, %v2513_v19  ;;  %v1257_v9 = vmul.f32 %v2501_v13, %v2880_v62 }
 0x20e   : > { %1704 = vst.msk [vmem:[%s3345_s4 + $0x34] sm:$0xf] %vm1690_vm6, %v1987_v14  ;;  %1705 = vst.msk [vmem:[%s3345_s4 + $0x38] sm:$0xf] %vm1690_vm6, %v1988_v49  ;;  %v1258_v11 = vmul.f32 %v2509_v17, %v2880_v62  ;;  %v1322_v40 = vadd.f32 %v2882_v46, %v1251_v38  ;;  %v1323_v37 = vadd.f32 %v2882_v46, %v1252_v18 }
 0x20f   : > { %1706 = vst.msk [vmem:[%s3345_s4 + $0x3c] sm:$0xf] %vm1690_vm6, %v1989_v52  ;;  %v1324_v43 = vadd.f32 %v2882_v46, %v1253_v60  ;;  %v1325_v22 = vadd.f32 %v2882_v46, %v1254_v4  ;;  %v1326_v6 = vadd.f32 %v2882_v46, %v1255_v5  ;;  %v1327_v15 = vadd.f32 %v2882_v46, %v1256_v7  ;;  %v3433_v7 = vld [vmem:[#allocation9_spill] sm:$0xff] }
 0x210   : > { %v1328_v19 = vadd.f32 %v2882_v46, %v1257_v9  ;;  %v1329_v16 = vadd.f32 %v2882_v46, %v1258_v11  ;;  %v1386_v13 = vmax.f32 %v1322_v40, 0.0  ;;  %v1387_v32 = vmax.f32 %v1323_v37, 0.0  ;;  %v3434_v11 = vld [vmem:[#allocation13_spill] sm:$0xff]  ;;  %v3435_v37 = vld [vmem:[#allocation7_spill] sm:$0xff] }
 0x211   : > { %v1388_v42 = vmax.f32 %v1324_v43, 0.0  ;;  %v1389_v17 = vmax.f32 %v1325_v22, 0.0  ;;  %v1390_v30 = vmax.f32 %v1326_v6, 0.0  ;;  %v1391_v41 = vmax.f32 %v1327_v15, 0.0  ;;  %v3436_v22 = vld [vmem:[#allocation11_spill] sm:$0xff]  ;;  %v3437_v15 = vld [vmem:[#allocation16_spill] sm:$0xff] }
 0x212   : > { %v1392_v54 = vmax.f32 %v1328_v19, 0.0  ;;  %v1393_v53 = vmax.f32 %v1329_v16, 0.0  ;;  %v1990_v55 = vpack.c.bf16 %v1386_v13, %v1386_v13  ;;  %v1991_v57 = vpack.c.bf16 %v1387_v32, %v1387_v32  ;;  %v3438_v16 = vld [vmem:[#allocation18_spill] sm:$0xff] }
 0x213   : > { %v1992_v59 = vpack.c.bf16 %v1388_v42, %v1388_v42  ;;  %v1993_v34 = vpack.c.bf16 %v1389_v17, %v1389_v17  ;;  %v1994_v24 = vpack.c.bf16 %v1390_v30, %v1390_v30  ;;  %v1995_v50 = vpack.c.bf16 %v1391_v41, %v1391_v41  ;;  %v3439_v32 = vld [vmem:[#allocation14_spill] sm:$0xff]  ;;  %v3440_v17 = vld [vmem:[#allocation17_spill] sm:$0xff] }
 0x214   : > { %v1996_v10 = vpack.c.bf16 %v1392_v54, %v1392_v54  ;;  %v1997_v39 = vpack.c.bf16 %v1393_v53, %v1393_v53  ;;  %1707 = vst.msk [vmem:[%s3345_s4 + $0x40] sm:$0xf] %vm1690_vm6, %v1990_v55  ;;  %1708 = vst.msk [vmem:[%s3345_s4 + $0x44] sm:$0xf] %vm1690_vm6, %v1991_v57  ;;  %v1259_v63 = vmul.f32 %v2880_v62, %v2521_v23 }
 0x215   : > { %1709 = vst.msk [vmem:[%s3345_s4 + $0x48] sm:$0xf] %vm1690_vm6, %v1992_v59  ;;  %1710 = vst.msk [vmem:[%s3345_s4 + $0x4c] sm:$0xf] %vm1690_vm6, %v1993_v34  ;;  %v1260_v3 = vmul.f32 %v2880_v62, %v2529_v27  ;;  %v1261_v48 = vmul.f32 %v2517_v21, %v2880_v62  ;;  %v1262_v61 = vmul.f32 %v2525_v25, %v2880_v62 }
 0x216   : > { %1711 = vst.msk [vmem:[%s3345_s4 + $0x50] sm:$0xf] %vm1690_vm6, %v1994_v24  ;;  %1712 = vst.msk [vmem:[%s3345_s4 + $0x54] sm:$0xf] %vm1690_vm6, %v1995_v50  ;;  %v1263_v21 = vmul.f32 %v2880_v62, %v2537_v31  ;;  %v1264_v23 = vmul.f32 %v2880_v62, %v2545_v35  ;;  %v1265_v25 = vmul.f32 %v2533_v29, %v2880_v62 }
 0x217   : > { %1713 = vst.msk [vmem:[%s3345_s4 + $0x58] sm:$0xf] %vm1690_vm6, %v1996_v10  ;;  %1714 = vst.msk [vmem:[%s3345_s4 + $0x5c] sm:$0xf] %vm1690_vm6, %v1997_v39  ;;  %v1266_v27 = vmul.f32 %v2541_v33, %v2880_v62  ;;  %v1330_v26 = vadd.f32 %v2882_v46, %v1259_v63  ;;  %v1331_v36 = vadd.f32 %v2882_v46, %v1260_v3 }
 0x218   : > { %v1332_v1 = vadd.f32 %v2882_v46, %v1261_v48  ;;  %v1333_v58 = vadd.f32 %v2882_v46, %v1262_v61  ;;  %v1334_v44 = vadd.f32 %v2882_v46, %v1263_v21  ;;  %v1335_v31 = vadd.f32 %v2882_v46, %v1264_v23 }
 0x219   : > { %v1336_v35 = vadd.f32 %v2882_v46, %v1265_v25  ;;  %v1337_v28 = vadd.f32 %v2882_v46, %v1266_v27  ;;  %v1394_v29 = vmax.f32 %v1330_v26, 0.0  ;;  %v1395_v56 = vmax.f32 %v1331_v36, 0.0 }
 0x21a   : > { %v1396_v20 = vmax.f32 %v1332_v1, 0.0  ;;  %v1397_v33 = vmax.f32 %v1333_v58, 0.0  ;;  %v1398_v51 = vmax.f32 %v1334_v44, 0.0  ;;  %v1399_v47 = vmax.f32 %v1335_v31, 0.0  ;;  %v3441_v31 = vld [vmem:[#allocation20_spill] sm:$0xff] }
 0x21b   : > { %v1400_v45 = vmax.f32 %v1336_v35, 0.0  ;;  %v1401_v0 = vmax.f32 %v1337_v28, 0.0  ;;  %v1998_v14 = vpack.c.bf16 %v1394_v29, %v1394_v29  ;;  %v1999_v49 = vpack.c.bf16 %v1395_v56, %v1395_v56  ;;  %v3442_v28 = vld [vmem:[#allocation22_spill] sm:$0xff]  ;;  %v3443_v56 = vld [vmem:[#allocation19_spill] sm:$0xff] }
 0x21c   : > { %v2000_v52 = vpack.c.bf16 %v1396_v20, %v1396_v20  ;;  %v2001_v38 = vpack.c.bf16 %v1397_v33, %v1397_v33  ;;  %v2002_v18 = vpack.c.bf16 %v1398_v51, %v1398_v51  ;;  %v2003_v60 = vpack.c.bf16 %v1399_v47, %v1399_v47  ;;  %v3444_v33 = vld [vmem:[#allocation21_spill] sm:$0xff]  ;;  %v3445_v47 = vld [vmem:[#allocation24_spill] sm:$0xff] }
 0x21d   : > { %v2004_v4 = vpack.c.bf16 %v1400_v45, %v1400_v45  ;;  %v2005_v5 = vpack.c.bf16 %v1401_v0, %v1401_v0  ;;  %1715 = vst.msk [vmem:[%s3345_s4 + $0x60] sm:$0xf] %vm1690_vm6, %v1998_v14  ;;  %1716 = vst.msk [vmem:[%s3345_s4 + $0x64] sm:$0xf] %vm1690_vm6, %v1999_v49  ;;  %v1267_v9 = vmul.f32 %v2880_v62, %v3433_v7  ;;  %v3446_v0 = vld [vmem:[#allocation25_spill] sm:$0xff]  ;;  %v3447_v49 = vld [vmem:[#allocation23_spill] sm:$0xff] }
 0x21e   : > { %1717 = vst.msk [vmem:[%s3345_s4 + $0x68] sm:$0xf] %vm1690_vm6, %v2000_v52  ;;  %1718 = vst.msk [vmem:[%s3345_s4 + $0x6c] sm:$0xf] %vm1690_vm6, %v2001_v38  ;;  %v1268_v40 = vmul.f32 %v2880_v62, %v3434_v11  ;;  %v1269_v43 = vmul.f32 %v3435_v37, %v2880_v62  ;;  %v1270_v6 = vmul.f32 %v3436_v22, %v2880_v62 }
 0x21f   : > { %1719 = vst.msk [vmem:[%s3345_s4 + $0x70] sm:$0xf] %vm1690_vm6, %v2002_v18  ;;  %1720 = vst.msk [vmem:[%s3345_s4 + $0x74] sm:$0xf] %vm1690_vm6, %v2003_v60  ;;  %v1271_v19 = vmul.f32 %v2880_v62, %v3437_v15  ;;  %v1272_v13 = vmul.f32 %v2880_v62, %v3438_v16  ;;  %v1273_v42 = vmul.f32 %v3439_v32, %v2880_v62 }
 0x220   : > { %1721 = vst.msk [vmem:[%s3345_s4 + $0x78] sm:$0xf] %vm1690_vm6, %v2004_v4  ;;  %1722 = vst.msk [vmem:[%s3345_s4 + $0x7c] sm:$0xf] %vm1690_vm6, %v2005_v5  ;;  %v1274_v30 = vmul.f32 %v3440_v17, %v2880_v62  ;;  %v1338_v41 = vadd.f32 %v2882_v46, %v1267_v9  ;;  %v1339_v54 = vadd.f32 %v2882_v46, %v1268_v40 }
 0x221   : > { %v1340_v53 = vadd.f32 %v2882_v46, %v1269_v43  ;;  %v1341_v55 = vadd.f32 %v2882_v46, %v1270_v6  ;;  %v1342_v57 = vadd.f32 %v2882_v46, %v1271_v19  ;;  %v1343_v59 = vadd.f32 %v2882_v46, %v1272_v13 }
 0x222   : > { %v1344_v34 = vadd.f32 %v2882_v46, %v1273_v42  ;;  %v1345_v24 = vadd.f32 %v2882_v46, %v1274_v30  ;;  %v1402_v50 = vmax.f32 %v1338_v41, 0.0  ;;  %v1403_v10 = vmax.f32 %v1339_v54, 0.0 }
 0x223   : > { %v1404_v39 = vmax.f32 %v1340_v53, 0.0  ;;  %v1405_v63 = vmax.f32 %v1341_v55, 0.0  ;;  %v1406_v3 = vmax.f32 %v1342_v57, 0.0  ;;  %v1407_v48 = vmax.f32 %v1343_v59, 0.0  ;;  %v3448_v59 = vld [vmem:[#allocation26_spill] sm:$0xff] }
 0x224   : > { %v1408_v61 = vmax.f32 %v1344_v34, 0.0  ;;  %v1409_v21 = vmax.f32 %v1345_v24, 0.0  ;;  %v2006_v23 = vpack.c.bf16 %v1402_v50, %v1402_v50  ;;  %v2007_v25 = vpack.c.bf16 %v1403_v10, %v1403_v10  ;;  %v3449_v24 = vld [vmem:[#allocation27_spill] sm:$0xff] }
 0x225   : > { %v2008_v27 = vpack.c.bf16 %v1404_v39, %v1404_v39  ;;  %v2009_v26 = vpack.c.bf16 %v1405_v63, %v1405_v63  ;;  %v2010_v36 = vpack.c.bf16 %v1406_v3, %v1406_v3  ;;  %v2011_v1 = vpack.c.bf16 %v1407_v48, %v1407_v48  ;;  %v3451_v10 = vld [vmem:[#allocation31_spill] sm:$0xff]  ;;  %v3452_v63 = vld [vmem:[#allocation28_spill] sm:$0xff]  ;;  %v3453_v48 = vld [vmem:[#allocation30_spill] sm:$0xff] }
 0x226   : > { %v2012_v58 = vpack.c.bf16 %v1408_v61, %v1408_v61  ;;  %v2013_v44 = vpack.c.bf16 %v1409_v21, %v1409_v21  ;;  %1723 = vst.msk [vmem:[%s3345_s4 + $0x80] sm:$0xf] %vm1690_vm6, %v2006_v23  ;;  %1724 = vst.msk [vmem:[%s3345_s4 + $0x84] sm:$0xf] %vm1690_vm6, %v2007_v25  ;;  %v1275_v35 = vmul.f32 %v2880_v62, %v3441_v31 }
 0x227   : > { %1725 = vst.msk [vmem:[%s3345_s4 + $0x88] sm:$0xf] %vm1690_vm6, %v2008_v27  ;;  %1726 = vst.msk [vmem:[%s3345_s4 + $0x8c] sm:$0xf] %vm1690_vm6, %v2009_v26  ;;  %v1276_v29 = vmul.f32 %v2880_v62, %v3442_v28  ;;  %v1277_v20 = vmul.f32 %v3443_v56, %v2880_v62  ;;  %v1278_v51 = vmul.f32 %v3444_v33, %v2880_v62 }
 0x228   : > { %1727 = vst.msk [vmem:[%s3345_s4 + $0x90] sm:$0xf] %vm1690_vm6, %v2010_v36  ;;  %1728 = vst.msk [vmem:[%s3345_s4 + $0x94] sm:$0xf] %vm1690_vm6, %v2011_v1  ;;  %v1279_v45 = vmul.f32 %v2880_v62, %v3445_v47  ;;  %v1280_v14 = vmul.f32 %v2880_v62, %v3446_v0  ;;  %v1281_v52 = vmul.f32 %v3447_v49, %v2880_v62 }
 0x229   : > { %1729 = vst.msk [vmem:[%s3345_s4 + $0x98] sm:$0xf] %vm1690_vm6, %v2012_v58  ;;  %1730 = vst.msk [vmem:[%s3345_s4 + $0x9c] sm:$0xf] %vm1690_vm6, %v2013_v44  ;;  %v1282_v38 = vmul.f32 %v2479_v2, %v2880_v62  ;;  %v1346_v18 = vadd.f32 %v2882_v46, %v1275_v35  ;;  %v1347_v60 = vadd.f32 %v2882_v46, %v1276_v29 }
 0x22a   : > { %v1348_v4 = vadd.f32 %v2882_v46, %v1277_v20  ;;  %v1349_v5 = vadd.f32 %v2882_v46, %v1278_v51  ;;  %v1350_v7 = vadd.f32 %v2882_v46, %v1279_v45  ;;  %v1351_v9 = vadd.f32 %v2882_v46, %v1280_v14 }
 0x22b   : > { %v1352_v11 = vadd.f32 %v2882_v46, %v1281_v52  ;;  %v1353_v40 = vadd.f32 %v2882_v46, %v1282_v38  ;;  %v1410_v37 = vmax.f32 %v1346_v18, 0.0  ;;  %v1411_v43 = vmax.f32 %v1347_v60, 0.0  ;;  %v3454_v18 = vld [vmem:[#allocation33_spill] sm:$0xff] }
 0x22c   : > { %v1412_v22 = vmax.f32 %v1348_v4, 0.0  ;;  %v1413_v2 = vmax.f32 %v1349_v5, 0.0  ;;  %v1414_v6 = vmax.f32 %v1350_v7, 0.0  ;;  %v1415_v15 = vmax.f32 %v1351_v9, 0.0  ;;  %v3455_v4 = vld [vmem:[#allocation35_spill] sm:$0xff]  ;;  %v3456_v7 = vld [vmem:[#allocation32_spill] sm:$0xff] }
 0x22d   : > { %v1416_v19 = vmax.f32 %v1352_v11, 0.0  ;;  %v1417_v16 = vmax.f32 %v1353_v40, 0.0  ;;  %v2014_v13 = vpack.c.bf16 %v1410_v37, %v1410_v37  ;;  %v2015_v32 = vpack.c.bf16 %v1411_v43, %v1411_v43  ;;  %v3457_v11 = vld [vmem:[#allocation34_spill] sm:$0xff]  ;;  %v3458_v37 = vld [vmem:[#allocation37_spill] sm:$0xff] }
 0x22e   : > { %v2016_v42 = vpack.c.bf16 %v1412_v22, %v1412_v22  ;;  %v2017_v17 = vpack.c.bf16 %v1413_v2, %v1413_v2  ;;  %v2018_v30 = vpack.c.bf16 %v1414_v6, %v1414_v6  ;;  %v2019_v41 = vpack.c.bf16 %v1415_v15, %v1415_v15  ;;  %v3459_v22 = vld [vmem:[#allocation39_spill] sm:$0xff]  ;;  %v3460_v6 = vld [vmem:[#allocation36_spill] sm:$0xff] }
 0x22f   : > { %v2020_v54 = vpack.c.bf16 %v1416_v19, %v1416_v19  ;;  %v2021_v53 = vpack.c.bf16 %v1417_v16, %v1417_v16  ;;  %1731 = vst.msk [vmem:[%s3345_s4 + $0xa0] sm:$0xf] %vm1690_vm6, %v2014_v13  ;;  %1732 = vst.msk [vmem:[%s3345_s4 + $0xa4] sm:$0xf] %vm1690_vm6, %v2015_v32  ;;  %v1283_v55 = vmul.f32 %v2880_v62, %v2491_v8  ;;  %v3450_v8 = vld [vmem:[#allocation29_spill] sm:$0xff]  ;;  %v3461_v19 = vld [vmem:[#allocation38_spill] sm:$0xff] }
 0x230   : > { %1733 = vst.msk [vmem:[%s3345_s4 + $0xa8] sm:$0xf] %vm1690_vm6, %v2016_v42  ;;  %1734 = vst.msk [vmem:[%s3345_s4 + $0xac] sm:$0xf] %vm1690_vm6, %v2017_v17  ;;  %v1284_v57 = vmul.f32 %v2880_v62, %v2499_v12  ;;  %v1285_v34 = vmul.f32 %v3448_v59, %v2880_v62  ;;  %v1286_v50 = vmul.f32 %v3449_v24, %v2880_v62 }
 0x231   : > { %1735 = vst.msk [vmem:[%s3345_s4 + $0xb0] sm:$0xf] %vm1690_vm6, %v2018_v30  ;;  %1736 = vst.msk [vmem:[%s3345_s4 + $0xb4] sm:$0xf] %vm1690_vm6, %v2019_v41  ;;  %v1287_v12 = vmul.f32 %v2880_v62, %v3450_v8  ;;  %v1288_v39 = vmul.f32 %v2880_v62, %v3451_v10  ;;  %v1289_v3 = vmul.f32 %v3452_v63, %v2880_v62 }
 0x232   : > { %1737 = vst.msk [vmem:[%s3345_s4 + $0xb8] sm:$0xf] %vm1690_vm6, %v2020_v54  ;;  %1738 = vst.msk [vmem:[%s3345_s4 + $0xbc] sm:$0xf] %vm1690_vm6, %v2021_v53  ;;  %v1290_v61 = vmul.f32 %v3453_v48, %v2880_v62  ;;  %v1354_v21 = vadd.f32 %v2882_v46, %v1283_v55  ;;  %v1355_v23 = vadd.f32 %v2882_v46, %v1284_v57 }
 0x233   : > { %v1356_v25 = vadd.f32 %v2882_v46, %v1285_v34  ;;  %v1357_v27 = vadd.f32 %v2882_v46, %v1286_v50  ;;  %v1358_v26 = vadd.f32 %v2882_v46, %v1287_v12  ;;  %v1359_v36 = vadd.f32 %v2882_v46, %v1288_v39 }
 0x234   : > { %v1360_v1 = vadd.f32 %v2882_v46, %v1289_v3  ;;  %v1361_v58 = vadd.f32 %v2882_v46, %v1290_v61  ;;  %v1418_v44 = vmax.f32 %v1354_v21, 0.0  ;;  %v1419_v31 = vmax.f32 %v1355_v23, 0.0 }
 0x235   : > { %v1420_v35 = vmax.f32 %v1356_v25, 0.0  ;;  %v1421_v28 = vmax.f32 %v1357_v27, 0.0  ;;  %v1422_v29 = vmax.f32 %v1358_v26, 0.0  ;;  %v1423_v56 = vmax.f32 %v1359_v36, 0.0 }
 0x236   : > { %v1424_v20 = vmax.f32 %v1360_v1, 0.0  ;;  %v1425_v33 = vmax.f32 %v1361_v58, 0.0  ;;  %v2022_v51 = vpack.c.bf16 %v1418_v44, %v1418_v44  ;;  %v2023_v47 = vpack.c.bf16 %v1419_v31, %v1419_v31 }
 0x237   : > { %v2024_v45 = vpack.c.bf16 %v1420_v35, %v1420_v35  ;;  %v2025_v0 = vpack.c.bf16 %v1421_v28, %v1421_v28  ;;  %v2026_v14 = vpack.c.bf16 %v1422_v29, %v1422_v29  ;;  %v2027_v49 = vpack.c.bf16 %v1423_v56, %v1423_v56 }
 0x238   : > { %v2028_v52 = vpack.c.bf16 %v1424_v20, %v1424_v20  ;;  %v2029_v38 = vpack.c.bf16 %v1425_v33, %v1425_v33  ;;  %1739 = vst.msk [vmem:[%s3345_s4 + $0xc0] sm:$0xf] %vm1690_vm6, %v2022_v51  ;;  %1740 = vst.msk [vmem:[%s3345_s4 + $0xc4] sm:$0xf] %vm1690_vm6, %v2023_v47  ;;  %v1291_v60 = vmul.f32 %v2880_v62, %v3454_v18 }
 0x239   : > { %1741 = vst.msk [vmem:[%s3345_s4 + $0xc8] sm:$0xf] %vm1690_vm6, %v2024_v45  ;;  %1742 = vst.msk [vmem:[%s3345_s4 + $0xcc] sm:$0xf] %vm1690_vm6, %v2025_v0  ;;  %v1292_v5 = vmul.f32 %v2880_v62, %v3455_v4  ;;  %v1293_v9 = vmul.f32 %v3456_v7, %v2880_v62  ;;  %v1294_v40 = vmul.f32 %v3457_v11, %v2880_v62 }
 0x23a   : > { %1743 = vst.msk [vmem:[%s3345_s4 + $0xd0] sm:$0xf] %vm1690_vm6, %v2026_v14  ;;  %1744 = vst.msk [vmem:[%s3345_s4 + $0xd4] sm:$0xf] %vm1690_vm6, %v2027_v49  ;;  %v1295_v43 = vmul.f32 %v2880_v62, %v3458_v37  ;;  %v1296_v2 = vmul.f32 %v2880_v62, %v3459_v22  ;;  %v1297_v15 = vmul.f32 %v3460_v6, %v2880_v62 }
 0x23b   : > { %1745 = vst.msk [vmem:[%s3345_s4 + $0xd8] sm:$0xf] %vm1690_vm6, %v2028_v52  ;;  %1746 = vst.msk [vmem:[%s3345_s4 + $0xdc] sm:$0xf] %vm1690_vm6, %v2029_v38  ;;  %v1298_v16 = vmul.f32 %v3461_v19, %v2880_v62  ;;  %v1362_v13 = vadd.f32 %v2882_v46, %v1291_v60  ;;  %v1363_v32 = vadd.f32 %v2882_v46, %v1292_v5 }
 0x23c   : > { %v1364_v42 = vadd.f32 %v2882_v46, %v1293_v9  ;;  %v1365_v17 = vadd.f32 %v2882_v46, %v1294_v40  ;;  %v1366_v30 = vadd.f32 %v2882_v46, %v1295_v43  ;;  %v1367_v41 = vadd.f32 %v2882_v46, %v1296_v2 }
 0x23d   : > { %v1368_v54 = vadd.f32 %v2882_v46, %v1297_v15  ;;  %v1369_v53 = vadd.f32 %v2882_v46, %v1298_v16  ;;  %v1426_v55 = vmax.f32 %v1362_v13, 0.0  ;;  %v1427_v57 = vmax.f32 %v1363_v32, 0.0 }
 0x23e   : > { %v1428_v59 = vmax.f32 %v1364_v42, 0.0  ;;  %v1429_v62 = vmax.f32 %v1365_v17, 0.0  ;;  %v1430_v34 = vmax.f32 %v1366_v30, 0.0  ;;  %v1431_v24 = vmax.f32 %v1367_v41, 0.0 }
 0x23f   : > { %v1432_v50 = vmax.f32 %v1368_v54, 0.0  ;;  %v1433_v8 = vmax.f32 %v1369_v53, 0.0  ;;  %v2030_v12 = vpack.c.bf16 %v1426_v55, %v1426_v55  ;;  %v2031_v10 = vpack.c.bf16 %v1427_v57, %v1427_v57 }
 0x240   : > { %v2032_v39 = vpack.c.bf16 %v1428_v59, %v1428_v59  ;;  %v2033_v63 = vpack.c.bf16 %v1429_v62, %v1429_v62  ;;  %v2034_v3 = vpack.c.bf16 %v1430_v34, %v1430_v34  ;;  %v2035_v48 = vpack.c.bf16 %v1431_v24, %v1431_v24 }
 0x241   : > { %v2036_v61 = vpack.c.bf16 %v1432_v50, %v1432_v50  ;;  %v2037_v21 = vpack.c.bf16 %v1433_v8, %v1433_v8  ;;  %1747 = vst.msk [vmem:[%s3345_s4 + $0xe0] sm:$0xf] %vm1690_vm6, %v2030_v12  ;;  %1748 = vst.msk [vmem:[%s3345_s4 + $0xe4] sm:$0xf] %vm1690_vm6, %v2031_v10 }
 0x242   : > { %1749 = vst.msk [vmem:[%s3345_s4 + $0xe8] sm:$0xf] %vm1690_vm6, %v2032_v39  ;;  %1750 = vst.msk [vmem:[%s3345_s4 + $0xec] sm:$0xf] %vm1690_vm6, %v2033_v63 }
 0x243   : > { %1751 = vst.msk [vmem:[%s3345_s4 + $0xf0] sm:$0xf] %vm1690_vm6, %v2034_v3  ;;  %1752 = vst.msk [vmem:[%s3345_s4 + $0xf4] sm:$0xf] %vm1690_vm6, %v2035_v48 }
 0x244   : > { %1753 = vst.msk [vmem:[%s3345_s4 + $0xf8] sm:$0xf] %vm1690_vm6, %v2036_v61  ;;  %1754 = vst.msk [vmem:[%s3345_s4 + $0xfc] sm:$0xf] %vm1690_vm6, %v2037_v21 }
 0x245 PF: > { %s14_s17 = sadd.s32 1, %s2235_s17   ;;  %s3462_s15 = smov %s2231_s16 }
 0x246   : > { %p11_p8 = scmp.ge.s32.totalorder %s14_s17, 4   ;;  %s3463_s16 = smov %s3465_s18 }
 0x248   :  { %13 = sbr.rel (!%p11_p8) target bundleno = 2 (0x2), region = 82 }

</bundles_post_ra>
